<compile_context>
chip_gen: v7x
topology: tpu7x:2x2x1
jax: 0.10.0
libtpu: 0.0.40
codegen_flags: <defaults>
</compile_context>

<pallas_src>
import functools

import jax
import jax.numpy as jnp
from jax.experimental import pallas as pl
from jax.experimental.pallas import tpu as pltpu

EPS = 1e-5                        # BatchNorm eps
_INV_SQRT2 = 0.7071067811865476   # 1/sqrt(2) for exact (erf) GELU


def _gelu_exact(x):
    return 0.5 * x * (1.0 + jax.lax.erf(x * _INV_SQRT2))


def duration_predictor_kernel(x_ref, mcol_ref, mrow_ref,
                              g1_ref, be1_ref, w1_ref, b1_ref,
                              g2_ref, be2_ref, w2_ref, b2_ref,
                              wpt_ref, bp_ref, out_ref, *, seq_len):
    x = x_ref[...]                               # (N, C) f32, row = b*T + t
    m = mcol_ref[...]                            # (N, 1) f32
    n = x.shape[0]

    # Hoist the broadcasted mask once (JAX does not CSE broadcast_in_dim).
    m_bc = jnp.broadcast_to(m, x.shape)          # (N, C)

    denom = jnp.maximum(jnp.sum(m), 1.0)         # guard all-masked batches
    inv_denom = 1.0 / denom                      # one scalar reciprocal

    # Sequence-boundary masks for the conv taps: a roll along the flattened row
    # axis wraps across batch boundaries / padding rows, so t==0 rows drop
    # their "previous" tap and t==T-1 rows drop their "next" tap (those taps
    # are the conv's zero padding).
    t_in_seq = jax.lax.broadcasted_iota(jnp.int32, (n, 1), 0) % seq_len
    prev_ok = (t_in_seq != 0).astype(jnp.float32)                # (N, 1)
    next_ok = (t_in_seq != (seq_len - 1)).astype(jnp.float32)    # (N, 1)

    def masked_bn_gelu(h, gamma, beta):
        # Masked BatchNorm1d (batch statistics over unmasked positions) with
        # the affine folded into a single scale/shift FMA, then exact GELU.
        hm = h * m_bc
        mean = jnp.sum(hm, axis=0, keepdims=True) * inv_denom             # (1, C)
        d = h - mean
        var = jnp.sum(d * d * m_bc, axis=0, keepdims=True) * inv_denom    # (1, C)
        scale = gamma * jax.lax.rsqrt(var + EPS)                          # (1, C)
        shift = beta - mean * scale                                       # (1, C)
        return _gelu_exact(h * scale + shift)

    def conv_same(h, w_stacked, bias):
        # 'same'-padded K=3 Conv1d as ONE MXU matmul over the stacked taps.
        hm = h * m_bc                                                     # masked conv input
        prev = pltpu.roll(hm, shift=1, axis=0) * prev_ok                  # h[t-1]
        nxt = pltpu.roll(hm, shift=n - 1, axis=0) * next_ok               # h[t+1]
        stacked = jnp.concatenate([prev, hm, nxt], axis=1)                # (N, 3C)
        y = jax.lax.dot_general(stacked.astype(jnp.bfloat16), w_stacked,
                                (((1,), (0,)), ((), ())),
                                preferred_element_type=jnp.float32)       # (N, C) f32
        return y + bias

    h = masked_bn_gelu(x, g1_ref[...], be1_ref[...])
    h = conv_same(h, w1_ref[...], b1_ref[...])
    h = masked_bn_gelu(h, g2_ref[...], be2_ref[...])
    h = conv_same(h, w2_ref[...], b2_ref[...])

    # proj_out (1x1 conv to 1 channel) computed transposed -> lane-dense
    # (1, N) row; then exp and mask.
    hm = (h * m_bc).astype(jnp.bfloat16)                                  # (N, C)
    logit = jax.lax.dot_general(wpt_ref[...], hm, (((1,), (1,)), ((), ())),
                                preferred_element_type=jnp.float32)       # (1, N)
    out_ref[...] = jnp.exp(logit + bp_ref[0, 0]) * mrow_ref[...]


@jax.jit
def duration_predictor(x_btc, mask_bt1, params):
    """x_btc: (B, T, C) f32 (channels-last), mask_bt1: (B, T, 1) f32 -> (B, T) f32."""
    B, T, C = x_btc.shape
    K = params["w1"].shape[0]
    N = B * T
    N_pad = ((N + 127) // 128) * 128            # lane-dense output, full sublane tiles

    x_flat = jnp.pad(x_btc.reshape(N, C), ((0, N_pad - N), (0, 0)))
    m_col = jnp.pad(mask_bt1.reshape(N, 1), ((0, N_pad - N), (0, 0)))
    m_row = m_col.reshape(1, N_pad)

    # Pre-stack the K conv taps into one (K*C, C) matrix; bf16 MXU operands.
    w1s = params["w1"].reshape(K * C, C).astype(jnp.bfloat16)
    w2s = params["w2"].reshape(K * C, C).astype(jnp.bfloat16)
    wpt = params["wp"].reshape(1, C).astype(jnp.bfloat16)      # transposed 1x1 proj

    args = (x_flat, m_col, m_row,
            params["gamma1"], params["beta1"], w1s, params["b1"],
            params["gamma2"], params["beta2"], w2s, params["b2"],
            wpt, params["bp"])

    vmem = pl.BlockSpec(memory_space=pltpu.MemorySpace.VMEM)
    smem = pl.BlockSpec(memory_space=pltpu.MemorySpace.SMEM)   # scalar proj bias
    out_row = pl.pallas_call(
        functools.partial(duration_predictor_kernel, seq_len=T),
        out_shape=jax.ShapeDtypeStruct((1, N_pad), jnp.float32),
        in_specs=[vmem] * (len(args) - 1) + [smem],
        out_specs=vmem,
    )(*args)
    return out_row[0, :N].reshape(B, T)


def duration_predictor_ref(x, m, p):
    """Independent (B, T, C)-layout reference (pad+slice conv) with matching
    bf16 matmul operands, for verification."""
    denom = jnp.maximum(jnp.sum(m), 1.0)

    def bn(h, gamma, beta):
        mean = jnp.sum(h * m, axis=(0, 1), keepdims=True) / denom
        var = jnp.sum(((h - mean) ** 2) * m, axis=(0, 1), keepdims=True) / denom
        return (h - mean) * jax.lax.rsqrt(var + EPS) * gamma[None] + beta[None]

    def conv(h, w, b):                     # w: (K, Cin, Cout)
        B_, T_, Cin = h.shape
        K = w.shape[0]
        pad = K // 2
        hp = jnp.pad(h, ((0, 0), (pad, pad), (0, 0)))
        taps = [hp[:, k:k + T_, :] for k in range(K)]          # [h[t-1], h[t], h[t+1]]
        stacked = jnp.concatenate(taps, axis=-1).astype(jnp.bfloat16)
        ws = w.reshape(K * Cin, -1).astype(jnp.bfloat16)
        y = jax.lax.dot_general(stacked, ws, (((2,), (0,)), ((), ())),
                                preferred_element_type=jnp.float32)
        return y + b[None]

    h = _gelu_exact(bn(x, p["gamma1"], p["beta1"]))
    h = conv(h * m, p["w1"], p["b1"])
    h = _gelu_exact(bn(h, p["gamma2"], p["beta2"]))
    h = conv(h * m, p["w2"], p["b2"])
    hm = (h * m).astype(jnp.bfloat16)
    logit = jax.lax.dot_general(hm, p["wp"].astype(jnp.bfloat16),
                                (((2,), (0,)), ((), ())),
                                preferred_element_type=jnp.float32) + p["bp"][0, 0]
    return (jnp.exp(logit) * m)[..., 0]


if __name__ == "__main__":
    B, T, C, K = 2, 16, 32, 3   # batch, seq length, hidden_channels, kernel_size

    key = jax.random.PRNGKey(0)
    ks = jax.random.split(key, 8)

    # Input corresponds to PyTorch x of shape (B, C, T) = (2, 32, 16), stored
    # channels-last (B, T, C) for the kernel.
    x = jax.random.normal(ks[0], (B, T, C), jnp.float32)
    # Ragged mask: batch 0 fully valid, batch 1 has its last 5 frames masked.
    lengths = jnp.array([T, T - 5], dtype=jnp.int32)
    mask = (jnp.arange(T)[None, :] < lengths[:, None]).astype(jnp.float32)[..., None]

    params = dict(
        # BatchNorm1d affine params (default init: gamma=1, beta=0)
        gamma1=jnp.ones((1, C), jnp.float32),
        beta1=jnp.zeros((1, C), jnp.float32),
        gamma2=jnp.ones((1, C), jnp.float32),
        beta2=jnp.zeros((1, C), jnp.float32),
        # conv1 / conv2: weight (K, C_in, C_out) == torch weight (C_out, C_in, K) transposed
        w1=0.1 * jax.random.normal(ks[1], (K, C, C), jnp.float32),
        b1=0.1 * jax.random.normal(ks[2], (1, C), jnp.float32),
        w2=0.1 * jax.random.normal(ks[3], (K, C, C), jnp.float32),
        b2=0.1 * jax.random.normal(ks[4], (1, C), jnp.float32),
        # proj_out: 1x1 conv C -> 1
        wp=0.1 * jax.random.normal(ks[5], (C, 1), jnp.float32),
        bp=0.1 * jax.random.normal(ks[6], (1, 1), jnp.float32),
    )

    out = duration_predictor(x, mask, params)
    jax.block_until_ready(out)

    ref = duration_predictor_ref(x, mask, params)
    assert out.shape == (B, T)
    max_err = jnp.max(jnp.abs(out - ref))
    assert jnp.allclose(out, ref, atol=2e-3, rtol=2e-3), f"mismatch vs reference, max abs err={max_err}"
    print("KERNEL_OK")
</pallas_src>

<mosaic_0001>
module attributes {stable_mosaic.version = 11 : i64} {
  func.func @duration_predictor_kernel(%arg0: memref<128x32xf32, #tpu.memory_space<vmem>>, %arg1: memref<128x1xf32, #tpu.memory_space<vmem>>, %arg2: memref<1x128xf32, #tpu.memory_space<vmem>>, %arg3: memref<1x32xf32, #tpu.memory_space<vmem>>, %arg4: memref<1x32xf32, #tpu.memory_space<vmem>>, %arg5: memref<96x32xbf16, #tpu.memory_space<vmem>>, %arg6: memref<1x32xf32, #tpu.memory_space<vmem>>, %arg7: memref<1x32xf32, #tpu.memory_space<vmem>>, %arg8: memref<1x32xf32, #tpu.memory_space<vmem>>, %arg9: memref<96x32xbf16, #tpu.memory_space<vmem>>, %arg10: memref<1x32xf32, #tpu.memory_space<vmem>>, %arg11: memref<1x32xbf16, #tpu.memory_space<vmem>>, %arg12: memref<1x1xf32, #tpu.memory_space<smem>>, %arg13: memref<1x128xf32, #tpu.memory_space<vmem>>) attributes {dimension_semantics = [], scalar_prefetch = 0 : i64, scratch_operands = 0 : i64, tpu.core_type = #tpu.core_type<tc>} {
    %c0 = arith.constant 0 : index
    %c0_0 = arith.constant 0 : index
    %0 = vector.load %arg0[%c0, %c0_0] : memref<128x32xf32, #tpu.memory_space<vmem>>, vector<128x32xf32>
    %c0_1 = arith.constant 0 : index
    %c0_2 = arith.constant 0 : index
    %1 = vector.load %arg1[%c0_1, %c0_2] : memref<128x1xf32, #tpu.memory_space<vmem>>, vector<128x1xf32>
    %2 = vector.shape_cast %1 : vector<128x1xf32> to vector<128x1xf32>
    %3 = vector.broadcast %2 : vector<128x1xf32> to vector<128x32xf32>
    %4 = vector.shape_cast %1 : vector<128x1xf32> to vector<1x128x1xf32>
    %cst = arith.constant dense<0.000000e+00> : vector<1xf32>
    %5 = vector.multi_reduction <add>, %4, %cst [1, 2] : vector<1x128x1xf32> to vector<1xf32>
    %6 = vector.shape_cast %5 : vector<1xf32> to vector<1x1x1xf32>
    %7 = vector.extract %6[0, 0, 0] : f32 from vector<1x1x1xf32>
    %cst_3 = arith.constant 1.000000e+00 : f32
    %8 = arith.maximumf %7, %cst_3 : f32
    %cst_4 = arith.constant 1.000000e+00 : f32
    %9 = arith.divf %cst_4, %8 : f32
    %10 = tpu.iota {dimensions = array<i32: 0>} : vector<128x1xi32>
    %c16_i32 = arith.constant 16 : i32
    %c0_i32 = arith.constant 0 : i32
    %11 = arith.cmpi eq, %c16_i32, %c0_i32 : i32
    %c1_i32 = arith.constant 1 : i32
    %12 = arith.select %11, %c1_i32, %c16_i32 : i32
    %13 = vector.broadcast %12 : i32 to vector<128x1xi32>
    %14 = arith.remsi %10, %13 : vector<128x1xi32>
    %c0_i32_5 = arith.constant 0 : i32
    %15 = vector.broadcast %c0_i32_5 : i32 to vector<128x1xi32>
    %16 = arith.cmpi ne, %14, %15 : vector<128x1xi32>
    %c0_i32_6 = arith.constant 0 : i32
    %17 = vector.broadcast %c0_i32_6 : i32 to vector<128x1xi32>
    %18 = arith.cmpi slt, %14, %17 : vector<128x1xi32>
    %c0_i32_7 = arith.constant 0 : i32
    %19 = arith.cmpi slt, %12, %c0_i32_7 : i32
    %20 = vector.broadcast %19 : i1 to vector<128x1xi1>
    %21 = vector.broadcast %20 : vector<128x1xi1> to vector<128x1xi1>
    %22 = arith.xori %18, %21 : vector<128x1xi1>
    %23 = arith.andi %22, %16 : vector<128x1xi1>
    %24 = vector.broadcast %12 : i32 to vector<128x1xi32>
    %25 = arith.addi %14, %24 : vector<128x1xi32>
    %26 = arith.select %23, %25, %14 : vector<128x1xi1>, vector<128x1xi32>
    %c0_i32_8 = arith.constant 0 : i32
    %27 = vector.broadcast %c0_i32_8 : i32 to vector<128x1xi32>
    %28 = arith.cmpi ne, %26, %27 : vector<128x1xi32>
    %29 = arith.extui %28 : vector<128x1xi1> to vector<128x1xi32>
    %30 = arith.sitofp %29 : vector<128x1xi32> to vector<128x1xf32>
    %c15_i32 = arith.constant 15 : i32
    %31 = vector.broadcast %c15_i32 : i32 to vector<128x1xi32>
    %32 = arith.cmpi ne, %26, %31 : vector<128x1xi32>
    %33 = arith.extui %32 : vector<128x1xi1> to vector<128x1xi32>
    %34 = arith.sitofp %33 : vector<128x1xi32> to vector<128x1xf32>
    %c0_9 = arith.constant 0 : index
    %c0_10 = arith.constant 0 : index
    %35 = vector.load %arg3[%c0_9, %c0_10] : memref<1x32xf32, #tpu.memory_space<vmem>>, vector<1x32xf32>
    %c0_11 = arith.constant 0 : index
    %c0_12 = arith.constant 0 : index
    %36 = vector.load %arg4[%c0_11, %c0_12] : memref<1x32xf32, #tpu.memory_space<vmem>>, vector<1x32xf32>
    %37 = arith.mulf %0, %3 : vector<128x32xf32>
    %cst_13 = arith.constant dense<0.000000e+00> : vector<32xf32>
    %38 = vector.multi_reduction <add>, %37, %cst_13 [0] : vector<128x32xf32> to vector<32xf32>
    %39 = vector.shape_cast %38 : vector<32xf32> to vector<1x32xf32>
    %40 = vector.broadcast %9 : f32 to vector<1x32xf32>
    %41 = arith.mulf %39, %40 : vector<1x32xf32>
    %42 = vector.broadcast %41 : vector<1x32xf32> to vector<128x32xf32>
    %43 = arith.subf %0, %42 : vector<128x32xf32>
    %44 = arith.mulf %43, %43 : vector<128x32xf32>
    %45 = arith.mulf %44, %3 : vector<128x32xf32>
    %cst_14 = arith.constant dense<0.000000e+00> : vector<32xf32>
    %46 = vector.multi_reduction <add>, %45, %cst_14 [0] : vector<128x32xf32> to vector<32xf32>
    %47 = vector.shape_cast %46 : vector<32xf32> to vector<1x32xf32>
    %48 = vector.broadcast %9 : f32 to vector<1x32xf32>
    %49 = arith.mulf %47, %48 : vector<1x32xf32>
    %cst_15 = arith.constant 9.99999974E-6 : f32
    %50 = vector.broadcast %cst_15 : f32 to vector<1x32xf32>
    %51 = arith.addf %49, %50 : vector<1x32xf32>
    %52 = math.rsqrt %51 : vector<1x32xf32>
    %53 = arith.mulf %35, %52 : vector<1x32xf32>
    %54 = arith.mulf %41, %53 : vector<1x32xf32>
    %55 = arith.subf %36, %54 : vector<1x32xf32>
    %56 = vector.broadcast %53 : vector<1x32xf32> to vector<128x32xf32>
    %57 = arith.mulf %0, %56 : vector<128x32xf32>
    %58 = vector.broadcast %55 : vector<1x32xf32> to vector<128x32xf32>
    %59 = arith.addf %57, %58 : vector<128x32xf32>
    %cst_16 = arith.constant 5.000000e-01 : f32
    %60 = vector.broadcast %cst_16 : f32 to vector<128x32xf32>
    %61 = arith.mulf %60, %59 : vector<128x32xf32>
    %cst_17 = arith.constant 0.707106769 : f32
    %62 = vector.broadcast %cst_17 : f32 to vector<128x32xf32>
    %63 = arith.mulf %59, %62 : vector<128x32xf32>
    %64 = math.erf %63 : vector<128x32xf32>
    %cst_18 = arith.constant 1.000000e+00 : f32
    %65 = vector.broadcast %cst_18 : f32 to vector<128x32xf32>
    %66 = arith.addf %65, %64 : vector<128x32xf32>
    %67 = arith.mulf %61, %66 : vector<128x32xf32>
    %c0_19 = arith.constant 0 : index
    %c0_20 = arith.constant 0 : index
    %68 = vector.load %arg5[%c0_19, %c0_20] : memref<96x32xbf16, #tpu.memory_space<vmem>>, vector<96x32xbf16>
    %c0_21 = arith.constant 0 : index
    %c0_22 = arith.constant 0 : index
    %69 = vector.load %arg6[%c0_21, %c0_22] : memref<1x32xf32, #tpu.memory_space<vmem>>, vector<1x32xf32>
    %70 = arith.mulf %67, %3 : vector<128x32xf32>
    %c1_i32_23 = arith.constant 1 : i32
    %71 = tpu.dynamic_rotate %70 by %c1_i32_23 dim 0 : vector<128x32xf32>, i32 -> vector<128x32xf32>
    %72 = vector.broadcast %30 : vector<128x1xf32> to vector<128x32xf32>
    %73 = arith.mulf %71, %72 : vector<128x32xf32>
    %c127_i32 = arith.constant 127 : i32
    %74 = tpu.dynamic_rotate %70 by %c127_i32 dim 0 : vector<128x32xf32>, i32 -> vector<128x32xf32>
    %75 = vector.broadcast %34 : vector<128x1xf32> to vector<128x32xf32>
    %76 = arith.mulf %74, %75 : vector<128x32xf32>
    %77 = tpu.concatenate %73, %70, %76 in 1 : vector<128x32xf32>, vector<128x32xf32>, vector<128x32xf32> -> vector<128x96xf32>
    %78 = arith.truncf %77 : vector<128x96xf32> to vector<128x96xbf16>
    %cst_24 = arith.constant dense<0.000000e+00> : vector<128x32xf32>
    %79 = tpu.matmul %78, %68, %cst_24 {dimension_numbers = #tpu.dot_dimension_numbers<[1], [0], [0], [1], [0, 0, 1, 1], [], []>} : vector<128x96xbf16>, vector<96x32xbf16>, vector<128x32xf32> -> vector<128x32xf32>
    %80 = vector.broadcast %69 : vector<1x32xf32> to vector<128x32xf32>
    %81 = arith.addf %79, %80 : vector<128x32xf32>
    %c0_25 = arith.constant 0 : index
    %c0_26 = arith.constant 0 : index
    %82 = vector.load %arg7[%c0_25, %c0_26] : memref<1x32xf32, #tpu.memory_space<vmem>>, vector<1x32xf32>
    %c0_27 = arith.constant 0 : index
    %c0_28 = arith.constant 0 : index
    %83 = vector.load %arg8[%c0_27, %c0_28] : memref<1x32xf32, #tpu.memory_space<vmem>>, vector<1x32xf32>
    %84 = arith.mulf %81, %3 : vector<128x32xf32>
    %cst_29 = arith.constant dense<0.000000e+00> : vector<32xf32>
    %85 = vector.multi_reduction <add>, %84, %cst_29 [0] : vector<128x32xf32> to vector<32xf32>
    %86 = vector.shape_cast %85 : vector<32xf32> to vector<1x32xf32>
    %87 = vector.broadcast %9 : f32 to vector<1x32xf32>
    %88 = arith.mulf %86, %87 : vector<1x32xf32>
    %89 = vector.broadcast %88 : vector<1x32xf32> to vector<128x32xf32>
    %90 = arith.subf %81, %89 : vector<128x32xf32>
    %91 = arith.mulf %90, %90 : vector<128x32xf32>
    %92 = arith.mulf %91, %3 : vector<128x32xf32>
    %cst_30 = arith.constant dense<0.000000e+00> : vector<32xf32>
    %93 = vector.multi_reduction <add>, %92, %cst_30 [0] : vector<128x32xf32> to vector<32xf32>
    %94 = vector.shape_cast %93 : vector<32xf32> to vector<1x32xf32>
    %95 = vector.broadcast %9 : f32 to vector<1x32xf32>
    %96 = arith.mulf %94, %95 : vector<1x32xf32>
    %cst_31 = arith.constant 9.99999974E-6 : f32
    %97 = vector.broadcast %cst_31 : f32 to vector<1x32xf32>
    %98 = arith.addf %96, %97 : vector<1x32xf32>
    %99 = math.rsqrt %98 : vector<1x32xf32>
    %100 = arith.mulf %82, %99 : vector<1x32xf32>
    %101 = arith.mulf %88, %100 : vector<1x32xf32>
    %102 = arith.subf %83, %101 : vector<1x32xf32>
    %103 = vector.broadcast %100 : vector<1x32xf32> to vector<128x32xf32>
    %104 = arith.mulf %81, %103 : vector<128x32xf32>
    %105 = vector.broadcast %102 : vector<1x32xf32> to vector<128x32xf32>
    %106 = arith.addf %104, %105 : vector<128x32xf32>
    %cst_32 = arith.constant 5.000000e-01 : f32
    %107 = vector.broadcast %cst_32 : f32 to vector<128x32xf32>
    %108 = arith.mulf %107, %106 : vector<128x32xf32>
    %cst_33 = arith.constant 0.707106769 : f32
    %109 = vector.broadcast %cst_33 : f32 to vector<128x32xf32>
    %110 = arith.mulf %106, %109 : vector<128x32xf32>
    %111 = math.erf %110 : vector<128x32xf32>
    %cst_34 = arith.constant 1.000000e+00 : f32
    %112 = vector.broadcast %cst_34 : f32 to vector<128x32xf32>
    %113 = arith.addf %112, %111 : vector<128x32xf32>
    %114 = arith.mulf %108, %113 : vector<128x32xf32>
    %c0_35 = arith.constant 0 : index
    %c0_36 = arith.constant 0 : index
    %115 = vector.load %arg9[%c0_35, %c0_36] : memref<96x32xbf16, #tpu.memory_space<vmem>>, vector<96x32xbf16>
    %c0_37 = arith.constant 0 : index
    %c0_38 = arith.constant 0 : index
    %116 = vector.load %arg10[%c0_37, %c0_38] : memref<1x32xf32, #tpu.memory_space<vmem>>, vector<1x32xf32>
    %117 = arith.mulf %114, %3 : vector<128x32xf32>
    %c1_i32_39 = arith.constant 1 : i32
    %118 = tpu.dynamic_rotate %117 by %c1_i32_39 dim 0 : vector<128x32xf32>, i32 -> vector<128x32xf32>
    %119 = vector.broadcast %30 : vector<128x1xf32> to vector<128x32xf32>
    %120 = arith.mulf %118, %119 : vector<128x32xf32>
    %c127_i32_40 = arith.constant 127 : i32
    %121 = tpu.dynamic_rotate %117 by %c127_i32_40 dim 0 : vector<128x32xf32>, i32 -> vector<128x32xf32>
    %122 = vector.broadcast %34 : vector<128x1xf32> to vector<128x32xf32>
    %123 = arith.mulf %121, %122 : vector<128x32xf32>
    %124 = tpu.concatenate %120, %117, %123 in 1 : vector<128x32xf32>, vector<128x32xf32>, vector<128x32xf32> -> vector<128x96xf32>
    %125 = arith.truncf %124 : vector<128x96xf32> to vector<128x96xbf16>
    %cst_41 = arith.constant dense<0.000000e+00> : vector<128x32xf32>
    %126 = tpu.matmul %125, %115, %cst_41 {dimension_numbers = #tpu.dot_dimension_numbers<[1], [0], [0], [1], [0, 0, 1, 1], [], []>} : vector<128x96xbf16>, vector<96x32xbf16>, vector<128x32xf32> -> vector<128x32xf32>
    %127 = vector.broadcast %116 : vector<1x32xf32> to vector<128x32xf32>
    %128 = arith.addf %126, %127 : vector<128x32xf32>
    %129 = arith.mulf %128, %3 : vector<128x32xf32>
    %130 = arith.truncf %129 : vector<128x32xf32> to vector<128x32xbf16>
    %c0_42 = arith.constant 0 : index
    %c0_43 = arith.constant 0 : index
    %131 = vector.load %arg11[%c0_42, %c0_43] : memref<1x32xbf16, #tpu.memory_space<vmem>>, vector<1x32xbf16>
    %cst_44 = arith.constant dense<0.000000e+00> : vector<1x128xf32>
    %132 = tpu.matmul %131, %130, %cst_44 {dimension_numbers = #tpu.dot_dimension_numbers<[1], [1], [0], [0], [0, 0, 1, 0], [], []>} : vector<1x32xbf16>, vector<128x32xbf16>, vector<1x128xf32> -> vector<1x128xf32>
    %c0_45 = arith.constant 0 : index
    %c0_46 = arith.constant 0 : index
    %133 = memref.load %arg12[%c0_45, %c0_46] : memref<1x1xf32, #tpu.memory_space<smem>>
    %134 = vector.broadcast %133 : f32 to vector<1x128xf32>
    %135 = arith.addf %132, %134 : vector<1x128xf32>
    %136 = math.exp %135 : vector<1x128xf32>
    %c0_47 = arith.constant 0 : index
    %c0_48 = arith.constant 0 : index
    %137 = vector.load %arg2[%c0_47, %c0_48] : memref<1x128xf32, #tpu.memory_space<vmem>>, vector<1x128xf32>
    %138 = arith.mulf %136, %137 : vector<1x128xf32>
    %c0_49 = arith.constant 0 : index
    %c0_50 = arith.constant 0 : index
    %139 = vector.load %arg13[%c0_49, %c0_50] : memref<1x128xf32, #tpu.memory_space<vmem>>, vector<1x128xf32>
    tpu.vector_store %arg13[%c0_49, %c0_50], %138 {strides = array<i32>} : memref<1x128xf32, #tpu.memory_space<vmem>>, vector<1x128xf32>,
    return
  }
}

</mosaic_0001>

<bundles_post_ra>
// kernel: squeeze.1
= control target key start
LH: loop header
LB: loop body
LE: loop exit
PB: predicated region body
PF: predicated region fallthrough
CT: control target
= control target key end

     0   :  { %s85_s0 = inlined_call_operand.vmem [shape: f32[32], index: 0, kind: input, shape index: {}]   ;;  %s86_s1 = inlined_call_operand.hbm [shape: f32[2,16], index: 1, kind: output, shape index: {}]  }
   0x1   :  { %v5_v0 = vld [vmem:[%s85_s0] sm:$0x1] }
   0x2   :  { %2 = vsyncpa [#allocation1], 0  ;;  %6 = vst [vmem:[#allocation3] sm:$0x1] %v5_v0  ;;  %vm8_vm0 = vcmask 130048   ;;  %s58_s0 = smov 112  }
   0x3   :  { %s59_s8 = smov [#allocation0]  }
   0x4   :  { %s26_s9 = sshll.u32 %s59_s8, 4  ;;  %s27_s9 = int_to_ptr.vmem [resolvable:$true] %s26_s9 }
   0x5   :  { %s34_s10 = scalar_lea.vmem %s27_s9, 32  ;;  %p39_p1 = scmp.lt.s32.totalorder %s27_s9, %s27_s9 }
   0x6   :  { %p35_p0 = scmp.ne.s32.totalorder %s27_s9, %s34_s10  ;;  %p40_p2 = scmp.lt.s32.totalorder %s34_s10, %s34_s10 }
   0x8   :  { %p41_p3 = por %p40_p2, %p39_p1 }
   0x9   :  { %v10_v1 = vld [vmem:[#allocation3] sm:$0x1]  }
   0xa   :  { %v7_v2 = vld [vmem:[#allocation3] sm:$0x1]   ;;  %11 = vrot.lane.b32.xlu0 %v10_v1, %s58_s0  ;;  %p42_p4 = pnand %p41_p3, %p35_p0 }
   0xb   :  { %9 = vst.msk [vmem:[#allocation2] sm:$0x1] %vm8_vm0, %v7_v2  }
  0x7c   :  { %v12_v3 = vpop.permute.xlu0 %11  }
  0x7d   :  { %15 = vst.msk [vmem:[#allocation2 + $0x1] sm:$0x1] %vm8_vm0, %v12_v3  }
  0x84   :  { %v19_v4 = vld [vmem:[#allocation2] sm:$0x3] }
  0x85   :  { %21 = vst [vmem:[#allocation0] sm:$0x3] %v19_v4 }
  0x86   :  { %45 = shalt.err (!%p42_p4)
}
  0x87   :  { %s46_s13 = scalar_lea.hbm %s86_s1, 32 }
  0x88   :  { %p47_p5 = scmp.ne.s32.totalorder %s86_s1, %s46_s13  ;;  %p50_p6 = scmp.lt.u32.totalorder %s46_s13, %s86_s1 }
  0x8a   :  { %p52_p7 = pnand %p50_p6, %p47_p5 }
  0x8c   :  { %55 = shalt.err (!%p52_p7)
}
  0x8d   :  { %29 = dma.vmem_to_hbm [thread:$0]  %s27_s9, 32, %s86_s1, [#allocation1]  }
  0x8e   :  { %56 = dma.done.wait [#allocation1], 32  }
  0x8f   :  { %57 = vsyncadd [#allocation1], 4294967264 }
  0x90   :  { %31 = vsyncpa [#allocation1], 1 }

// kernel: duration_predictor.1
= control target key start
LH: loop header
LB: loop body
LE: loop exit
PB: predicated region body
PF: predicated region fallthrough
CT: control target
= control target key end

     0   :  { %vm158_vm0 = vcmask 7168   ;;  %v2487_v3 = vmov 0   ;;  %vm526_vm1 = vcmask 261120   ;;  %s2488_s23 = smov 1.0   ;;  %s2490_s18 = smov 32   ;;  %vm1052_vm15 = vcmask 523264   ;;  %s3918_s1 = inlined_call_operand.vmem [shape: f32[128,1], index: 1, kind: input, shape index: {}]   ;;  %s3919_s0 = inlined_call_operand.vmem [shape: f32[128,32], index: 0, kind: input, shape index: {}]   ;;  %s3920_s5 = inlined_call_operand.vmem [shape: bf16[96,32], index: 5, kind: input, shape index: {}]   ;;  %s3921_s3 = inlined_call_operand.vmem [shape: f32[1,32], index: 3, kind: input, shape index: {}]   ;;  %s3922_s4 = inlined_call_operand.vmem [shape: f32[1,32], index: 4, kind: input, shape index: {}]   ;;  %s3923_s6 = inlined_call_operand.vmem [shape: f32[1,32], index: 6, kind: input, shape index: {}]   ;;  %s3924_s9 = inlined_call_operand.vmem [shape: bf16[96,32], index: 9, kind: input, shape index: {}]   ;;  %s3925_s7 = inlined_call_operand.vmem [shape: f32[1,32], index: 7, kind: input, shape index: {}]   ;;  %s3926_s8 = inlined_call_operand.vmem [shape: f32[1,32], index: 8, kind: input, shape index: {}]   ;;  %s3927_s10 = inlined_call_operand.vmem [shape: f32[1,32], index: 10, kind: input, shape index: {}]   ;;  %s3928_s11 = inlined_call_operand.vmem [shape: bf16[1,32], index: 11, kind: input, shape index: {}]   ;;  %s3929_s12 = inlined_call_operand.<no memory space> [shape: f32[1,1], index: 12, kind: input, shape index: {}]   ;;  %s3930_s2 = inlined_call_operand.vmem [shape: f32[1,128], index: 2, kind: input, shape index: {}]   ;;  %s3931_s13 = inlined_call_operand.vmem [shape: f32[1,128], index: 13, kind: output, shape index: {}]  }
   0x1   :  { %v2566_v0 = vld [vmem:[%s3918_s1] sm:$0xff]  ;;  %v63_v1 = vld [vmem:[%s3918_s1 + $0x8] sm:$0xff]  ;;  %v64_v2 = vld [vmem:[%s3918_s1 + $0x10] sm:$0xff]  ;;  %2242 = vset.pattern.permute.xlu1 %v2487_v3  ;;  %2241 = vset.pattern.permute.xlu0 %v2487_v3 }
   0x2   :  { %v65_v4 = vld [vmem:[%s3918_s1 + $0x18] sm:$0xff]  ;;  %v159_v5 = vsel %vm158_vm0, %v2566_v0, 0.0  ;;  %v160_v6 = vsel %vm158_vm0, %v63_v1, 0.0  ;;  %v162_v7 = vsel %vm158_vm0, %v64_v2, 0.0  ;;  %85 = vperm.xlu1 %2242, %v63_v1   ;;  %v66_v8 = vld [vmem:[%s3918_s1 + $0x20] sm:$0xff]  ;;  %v67_v11 = vld [vmem:[%s3918_s1 + $0x28] sm:$0xff] }
   0x3   :  { %v161_v9 = vadd.f32 %v160_v6, %v159_v5  ;;  %v164_v10 = vsel %vm158_vm0, %v65_v4, 0.0  ;;  %v166_v13 = vsel %vm158_vm0, %v66_v8, 0.0  ;;  %v68_v14 = vld [vmem:[%s3918_s1 + $0x30] sm:$0xff]  ;;  %v168_v16 = vsel %vm158_vm0, %v67_v11, 0.0  ;;  %v69_v17 = vld [vmem:[%s3918_s1 + $0x38] sm:$0xff]  ;;  %v70_v20 = vld [vmem:[%s3918_s1 + $0x40] sm:$0xff] }
   0x4   :  { %v170_v19 = vsel %vm158_vm0, %v68_v14, 0.0  ;;  %v172_v22 = vsel %vm158_vm0, %v69_v17, 0.0  ;;  %v71_v23 = vld [vmem:[%s3918_s1 + $0x48] sm:$0xff]  ;;  %v174_v25 = vsel %vm158_vm0, %v70_v20, 0.0  ;;  %v72_v26 = vld [vmem:[%s3918_s1 + $0x50] sm:$0xff]  ;;  %v73_v29 = vld [vmem:[%s3918_s1 + $0x58] sm:$0xff] }
   0x5   :  { %v163_v12 = vadd.f32 %v162_v7, %v161_v9  ;;  %v176_v28 = vsel %vm158_vm0, %v71_v23, 0.0  ;;  %v178_v31 = vsel %vm158_vm0, %v72_v26, 0.0  ;;  %v74_v32 = vld [vmem:[%s3918_s1 + $0x60] sm:$0xff]  ;;  %v180_v34 = vsel %vm158_vm0, %v73_v29, 0.0  ;;  %v75_v35 = vld [vmem:[%s3918_s1 + $0x68] sm:$0xff]  ;;  %v76_v38 = vld [vmem:[%s3918_s1 + $0x70] sm:$0xff] }
   0x6   :  { %90 = vperm.xlu1 %2242, %v64_v2   ;;  %v182_v37 = vsel %vm158_vm0, %v74_v32, 0.0  ;;  %v184_v40 = vsel %vm158_vm0, %v75_v35, 0.0  ;;  %v77_v41 = vld [vmem:[%s3918_s1 + $0x78] sm:$0xff]  ;;  %v186_v43 = vsel %vm158_vm0, %v76_v38, 0.0  ;;  %v2642_v59 = vld [vmem:[%s3919_s0 + $0x8] sm:$0xff]  ;;  %v2649_v61 = vld [vmem:[%s3919_s0] sm:$0xff] }
   0x7   :  { %v165_v15 = vadd.f32 %v164_v10, %v163_v12  ;;  %v188_v45 = vsel %vm158_vm0, %v77_v41, 0.0  ;;  %v2660_v1 = vld [vmem:[%s3919_s0 + $0x10] sm:$0xff]  ;;  %v2669_v5 = vld [vmem:[%s3919_s0 + $0x18] sm:$0xff]  ;;  %v2679_v10 = vld [vmem:[%s3919_s0 + $0x20] sm:$0xff] }
   0x9   :  { %v167_v18 = vadd.f32 %v166_v13, %v165_v15  ;;  %v2689_v15 = vld [vmem:[%s3919_s0 + $0x28] sm:$0xff] }
   0xa   :  { %95 = vperm.xlu1 %2242, %v65_v4  }
   0xb   :  { %v169_v21 = vadd.f32 %v168_v16, %v167_v18 }
   0xd   :  { %v171_v24 = vadd.f32 %v170_v19, %v169_v21  ;;  %v2697_v19 = vld [vmem:[%s3919_s0 + $0x30] sm:$0xff] }
   0xe   :  { %100 = vperm.xlu1 %2242, %v66_v8  }
   0xf   :  { %v173_v27 = vadd.f32 %v172_v22, %v171_v24  ;;  %v2707_v24 = vld [vmem:[%s3919_s0 + $0x38] sm:$0xff] }
  0x11   :  { %v175_v30 = vadd.f32 %v174_v25, %v173_v27 }
  0x12   :  { %105 = vperm.xlu1 %2242, %v67_v11  }
  0x13   :  { %v177_v33 = vadd.f32 %v176_v28, %v175_v30 }
  0x15   :  { %v179_v36 = vadd.f32 %v178_v31, %v177_v33 }
  0x16   :  { %110 = vperm.xlu1 %2242, %v68_v14  }
  0x17   :  { %v181_v39 = vadd.f32 %v180_v34, %v179_v36  ;;  %v2725_v34 = vld [vmem:[%s3919_s0 + $0x48] sm:$0xff] }
  0x19   :  { %v183_v42 = vadd.f32 %v182_v37, %v181_v39  ;;  %v2735_v39 = vld [vmem:[%s3919_s0 + $0x50] sm:$0xff] }
  0x1a   :  { %115 = vperm.xlu1 %2242, %v69_v17  }
  0x1b   :  { %v185_v44 = vadd.f32 %v184_v40, %v183_v42 }
  0x1d   :  { %v187_v46 = vadd.f32 %v186_v43, %v185_v44 }
  0x1e   :  { %120 = vperm.xlu1 %2242, %v70_v20  }
  0x1f   :  { %v189_v47 = vadd.f32 %v188_v45, %v187_v46  ;;  %v2745_v45 = vld [vmem:[%s3919_s0 + $0x58] sm:$0xff] }
  0x21   :  { %190 = vadd.xlane.f32.xlu0 %v189_v47 }
  0x22   :  { %125 = vperm.xlu1 %2242, %v71_v23  }
  0x26   :  { %130 = vperm.xlu1 %2242, %v72_v26  }
  0x2a   :  { %135 = vperm.xlu1 %2242, %v73_v29   ;;  %v2717_v29 = vld [vmem:[%s3919_s0 + $0x40] sm:$0xff] }
  0x2e   :  { %140 = vperm.xlu1 %2242, %v74_v32  }
  0x32   :  { %150 = vperm.xlu1 %2242, %v76_v38  }
  0x37   :  { %80 = vperm.xlu0 %2241, %v2566_v0  }
  0x3b   :  { %145 = vperm.xlu0 %2241, %v75_v35  }
  0x3f   :  { %155 = vperm.xlu0 %2241, %v77_v41  }
  0x81   :  { %v2631_v55 = vpop.permute.xlu1 %85 }
  0x82   :  { %v511_v63 = vmul.f32 %v2631_v55, %v2642_v59 }
  0x84   :  { %v528_v2 = vsel %vm526_vm1, %v511_v63, 0.0  ;;  %v2765_v63 = vld [vmem:[%s3919_s0 + $0x68] sm:$0xff] }
  0x85   :  { %v2633_v56 = vpop.permute.xlu1 %90 }
  0x86   :  { %v512_v3 = vmul.f32 %v2633_v56, %v2660_v1 }
  0x88   :  { %v530_v8 = vsel %vm526_vm1, %v512_v3, 0.0 }
  0x89   :  { %v2635_v57 = vpop.permute.xlu1 %95 }
  0x8a   :  { %v513_v9 = vmul.f32 %v2635_v57, %v2669_v5 }
  0x8c   :  { %v532_v13 = vsel %vm526_vm1, %v513_v9, 0.0 }
  0x8d   :  { %v2637_v58 = vpop.permute.xlu1 %100 }
  0x8e   :  { %v514_v14 = vmul.f32 %v2637_v58, %v2679_v10 }
  0x90   :  { %v534_v17 = vsel %vm526_vm1, %v514_v14, 0.0  ;;  %v2785_v14 = vld [vmem:[%s3919_s0 + $0x78] sm:$0xff] }
  0x91   :  { %v2651_v62 = vpop.permute.xlu1 %105 }
  0x92   :  { %v515_v18 = vmul.f32 %v2651_v62, %v2689_v15 }
  0x94   :  { %v536_v22 = vsel %vm526_vm1, %v515_v18, 0.0 }
  0x95   :  { %v2671_v6 = vpop.permute.xlu1 %110 }
  0x96   :  { %v516_v23 = vmul.f32 %v2671_v6, %v2697_v19 }
  0x98   :  { %v538_v27 = vsel %vm526_vm1, %v516_v23, 0.0 }
  0x99   :  { %v2681_v12 = vpop.permute.xlu1 %115 }
  0x9a   :  { %v517_v28 = vmul.f32 %v2681_v12, %v2707_v24 }
  0x9c   :  { %v540_v32 = vsel %vm526_vm1, %v517_v28, 0.0 }
  0x9d   :  { %v2699_v20 = vpop.permute.xlu1 %120 }
  0x9e   :  { %v518_v33 = vmul.f32 %v2699_v20, %v2717_v29 }
  0xa0   :  { %v542_v37 = vsel %vm526_vm1, %v518_v33, 0.0 }
  0xa1   :  { %v2709_v26 = vpop.permute.xlu1 %125 }
  0xa2   :  { %v519_v38 = vmul.f32 %v2709_v26, %v2725_v34 }
  0xa4   :  { %v544_v42 = vsel %vm526_vm1, %v519_v38, 0.0 }
  0xa5   :  { %v2727_v35 = vpop.permute.xlu1 %130 }
  0xa6   :  { %v520_v43 = vmul.f32 %v2727_v35, %v2735_v39 }
  0xa8   :  { %v546_v47 = vsel %vm526_vm1, %v520_v43, 0.0 }
  0xa9   :  { %v2737_v41 = vpop.permute.xlu1 %135 }
  0xae   :  { %v191_v48 = vpop.xlane.xlu0 %190 }
  0xaf   :  { %v192_v49 = vrot.slane %v191_v48, 4 }
  0xb1   :  { %v193_v50 = vadd.f32 %v192_v49, %v191_v48  ;;  %v521_v48 = vmul.f32 %v2737_v41, %v2745_v45  ;;  %v2750_v49 = vpop.permute.xlu1 %140 }
  0xb3   :  { %v194_v51 = vrot.slane %v193_v50, 2 }
  0xb5   :  { %v195_v52 = vadd.f32 %v194_v51, %v193_v50  ;;  %v2755_v50 = vld [vmem:[%s3919_s0 + $0x60] sm:$0xff] }
  0xb6   :  { %v2644_v60 = vpop.permute.xlu0 %80 }
  0xb7   :  { %v196_v53 = vrot.slane %v195_v52, 1  ;;  %v510_v0 = vmul.f32 %v2644_v60, %v2649_v61 }
  0xb9   :  { %v197_v54 = vadd.f32 %v196_v53, %v195_v52  ;;  %v527_v4 = vsel %vm526_vm1, %v510_v0, 0.0  ;;  %v548_v52 = vsel %vm526_vm1, %v521_v48, 0.0  ;;  %v522_v53 = vmul.f32 %v2750_v49, %v2755_v50 }
  0xba   :  { %v529_v7 = vadd.f32 %v528_v2, %v527_v4  ;;  %v2770_v4 = vpop.permute.xlu1 %150 }
  0xbb   :  { %2231 = vpush %v197_v54  ;;  %v2760_v54 = vpop.permute.xlu0 %145  ;;  %v550_v2 = vsel %vm526_vm1, %v522_v53, 0.0 }
  0xbc   :  { %v531_v11 = vadd.f32 %v530_v8, %v529_v7  ;;  %v523_v3 = vmul.f32 %v2760_v54, %v2765_v63  ;;  %v2775_v7 = vld [vmem:[%s3919_s0 + $0x70] sm:$0xff] }
  0xbe   :  { %v533_v16 = vadd.f32 %v532_v13, %v531_v11  ;;  %v552_v9 = vsel %vm526_vm1, %v523_v3, 0.0  ;;  %v524_v11 = vmul.f32 %v2770_v4, %v2775_v7  ;;  %v2404_v3 = vld [vmem:[%s3920_s5 + $0x8] sm:$0xff]  }
  0xbf   :  { %v2780_v13 = vpop.permute.xlu0 %155 }
  0xc0   :  { %v535_v21 = vadd.f32 %v534_v17, %v533_v16  ;;  %v554_v17 = vsel %vm526_vm1, %v524_v11, 0.0  ;;  %v525_v18 = vmul.f32 %v2780_v13, %v2785_v14 }
  0xc2   :  { %v537_v25 = vadd.f32 %v536_v22, %v535_v21  ;;  %v556_v22 = vsel %vm526_vm1, %v525_v18, 0.0 }
  0xc4   :  { %v539_v31 = vadd.f32 %v538_v27, %v537_v25  ;;  %v3932_v27 = vmov 0.0  }
  0xc5   :  { %2211 = vmatprep.subr.bf16.mxu0 %v3932_v27 }
  0xc6   :  { %v541_v36 = vadd.f32 %v540_v32, %v539_v31 }
  0xc8   :  { %v543_v40 = vadd.f32 %v542_v37, %v541_v36 }
  0xca   :  { %v545_v46 = vadd.f32 %v544_v42, %v543_v40 }
  0xcc   :  { %v547_v51 = vadd.f32 %v546_v47, %v545_v46 }
  0xce   :  { %v549_v0 = vadd.f32 %v548_v52, %v547_v51  ;;  %v2403_v51 = vld [vmem:[%s3920_s5] sm:$0xff]  }
  0xcf   :  { %2155 = vmatprep.subr.bf16.mxu1 %v2403_v51 }
  0xd0   :  { %v551_v8 = vadd.f32 %v550_v2, %v549_v0  ;;  %2156 = vmatpush3.bf16.msra.mxu1 %v2403_v51 }
  0xd1   :  { %2157 = vmatprep.subr.bf16.mxu1 %v2404_v3 }
  0xd2   :  { %v553_v16 = vadd.f32 %v552_v9, %v551_v8 }
  0xd4   :  { %v555_v21 = vadd.f32 %v554_v17, %v553_v16  ;;  %v2405_v16 = vld [vmem:[%s3920_s5 + $0x10] sm:$0xff]   ;;  %2158 = vmatpush3.bf16.msra.mxu1 %v2404_v3 }
  0xd5   :  { %2159 = vmatprep.subr.bf16.mxu1 %v2405_v16 }
  0xd6   :  { %v557_v23 = vadd.f32 %v556_v22, %v555_v21 }
  0xd8   :  { %v558_v25 = vrot.slane %v557_v23, 4  ;;  %2160 = vmatpush3.bf16.msra.mxu1 %v2405_v16 }
  0xda   :  { %v559_v28 = vadd.f32 %v558_v25, %v557_v23 }
  0xec   :  { %s2232_s21 = spop %2231 }
  0xed   :  { %s199_s24 = smax.f32 %s2488_s23, %s2232_s21 }
  0xee   :  { %v200_v30 = vstv %s199_s24 }
  0xef   :  { %2415 = vrcp.f32 %v200_v30  ;;  %v560_v30 = vrot.slane %v559_v28, 2 }
  0xf1   :  { %v561_v31 = vadd.f32 %v560_v30, %v559_v28 }
  0xf3   :  { %v562_v32 = vrot.slane %v561_v31, 1 }
  0xf5   :  { %v563_v33 = vadd.f32 %v562_v32, %v561_v31 }
  0xf9   :  { %v2416_v44 = vpop.eup %2415 }
  0xfa   :  { %2233 = vpush %v2416_v44 }
 0x12b   :  { %s2234_s0 = spop %2233 }
 0x12c   :  { %v2792_v36 = vstv %s2234_s0 }
 0x12d   :  { %v2795_v37 = vmul.f32 %v2792_v36, %v563_v33 }
 0x12f   :  { %v566_v38 = vsub.f32 %v2649_v61, %v2795_v37  ;;  %v567_v40 = vsub.f32 %v2642_v59, %v2795_v37  ;;  %v568_v42 = vsub.f32 %v2660_v1, %v2795_v37  ;;  %v569_v43 = vsub.f32 %v2669_v5, %v2795_v37 }
 0x130   :  { %v570_v47 = vsub.f32 %v2679_v10, %v2795_v37  ;;  %v571_v52 = vsub.f32 %v2689_v15, %v2795_v37  ;;  %v572_v8 = vsub.f32 %v2697_v19, %v2795_v37  ;;  %v573_v17 = vsub.f32 %v2707_v24, %v2795_v37 }
 0x131   :  { %v582_v44 = vmul.f32 %v566_v38, %v566_v38  ;;  %v583_v46 = vmul.f32 %v567_v40, %v567_v40  ;;  %v584_v48 = vmul.f32 %v568_v42, %v568_v42  ;;  %v585_v53 = vmul.f32 %v569_v43, %v569_v43  ;;  %v2406_v38 = vld [vmem:[%s3920_s5 + $0x18] sm:$0xff]  }
 0x132   :  { %v586_v9 = vmul.f32 %v570_v47, %v570_v47  ;;  %v587_v18 = vmul.f32 %v571_v52, %v571_v52  ;;  %v574_v28 = vsub.f32 %v2717_v29, %v2795_v37  ;;  %v588_v30 = vmul.f32 %v572_v8, %v572_v8  ;;  %2161 = vmatprep.subr.bf16.mxu1 %v2406_v38 }
 0x133   :  { %v598_v0 = vmul.f32 %v582_v44, %v2644_v60  ;;  %v599_v2 = vmul.f32 %v583_v46, %v2631_v55  ;;  %v600_v11 = vmul.f32 %v584_v48, %v2633_v56  ;;  %v601_v21 = vmul.f32 %v585_v53, %v2635_v57  ;;  %2162 = vmatpush3.bf16.msra.mxu1 %v2406_v38 }
 0x134   :  { %v602_v31 = vmul.f32 %v586_v9, %v2637_v58  ;;  %v575_v40 = vsub.f32 %v2725_v34, %v2795_v37  ;;  %v589_v42 = vmul.f32 %v573_v17, %v573_v17  ;;  %v603_v43 = vmul.f32 %v587_v18, %v2651_v62 }
 0x135   :  { %v614_v22 = vsel %vm526_vm1, %v598_v0, 0.0  ;;  %v615_v23 = vsel %vm526_vm1, %v599_v2, 0.0  ;;  %v617_v32 = vsel %vm526_vm1, %v600_v11, 0.0  ;;  %v619_v44 = vsel %vm526_vm1, %v601_v21, 0.0 }
 0x136   :  { %v616_v25 = vadd.f32 %v615_v23, %v614_v22  ;;  %v576_v47 = vsub.f32 %v2735_v39, %v2795_v37  ;;  %v590_v48 = vmul.f32 %v574_v28, %v574_v28  ;;  %v604_v51 = vmul.f32 %v588_v30, %v2671_v6 }
 0x137   :  { %v621_v52 = vsel %vm526_vm1, %v602_v31, 0.0  ;;  %v577_v0 = vsub.f32 %v2745_v45, %v2795_v37  ;;  %v591_v2 = vmul.f32 %v575_v40, %v575_v40  ;;  %v605_v3 = vmul.f32 %v589_v42, %v2681_v12 }
 0x138   :  { %v618_v33 = vadd.f32 %v617_v32, %v616_v25  ;;  %v623_v8 = vsel %vm526_vm1, %v603_v43, 0.0  ;;  %v578_v11 = vsub.f32 %v2755_v50, %v2795_v37  ;;  %v592_v17 = vmul.f32 %v576_v47, %v576_v47 }
 0x139   :  { %v606_v18 = vmul.f32 %v590_v48, %v2699_v20  ;;  %v625_v21 = vsel %vm526_vm1, %v604_v51, 0.0  ;;  %v579_v22 = vsub.f32 %v2765_v63, %v2795_v37  ;;  %v593_v23 = vmul.f32 %v577_v0, %v577_v0 }
 0x13a   :  { %v620_v46 = vadd.f32 %v619_v44, %v618_v33  ;;  %v607_v25 = vmul.f32 %v591_v2, %v2709_v26  ;;  %v627_v28 = vsel %vm526_vm1, %v605_v3, 0.0  ;;  %v580_v31 = vsub.f32 %v2775_v7, %v2795_v37 }
 0x13b   :  { %v594_v32 = vmul.f32 %v578_v11, %v578_v11  ;;  %v608_v33 = vmul.f32 %v592_v17, %v2727_v35  ;;  %v629_v40 = vsel %vm526_vm1, %v606_v18, 0.0  ;;  %v581_v38 = vsub.f32 %v2785_v14, %v2795_v37 }
 0x13c   :  { %v622_v53 = vadd.f32 %v621_v52, %v620_v46  ;;  %v595_v43 = vmul.f32 %v579_v22, %v579_v22  ;;  %v609_v44 = vmul.f32 %v593_v23, %v2737_v41  ;;  %v631_v46 = vsel %vm526_vm1, %v607_v25, 0.0 }
 0x13d   :  { %v596_v48 = vmul.f32 %v580_v31, %v580_v31  ;;  %v610_v51 = vmul.f32 %v594_v32, %v2750_v49  ;;  %v633_v52 = vsel %vm526_vm1, %v608_v33, 0.0  ;;  %v597_v0 = vmul.f32 %v581_v38, %v581_v38 }
 0x13e   :  { %v624_v9 = vadd.f32 %v623_v8, %v622_v53  ;;  %v611_v2 = vmul.f32 %v595_v43, %v2760_v54  ;;  %v635_v3 = vsel %vm526_vm1, %v609_v44, 0.0  ;;  %v203_v43 = vlaneseq }
 0x13f   :  { %v637_v11 = vsel %vm526_vm1, %v610_v51, 0.0  ;;  %v613_v18 = vmul.f32 %v597_v0, %v2780_v13  ;;  %v508_v0 = vld [vmem:[%s3921_s3] sm:$0x1] }
 0x140   :  { %v626_v16 = vadd.f32 %v625_v21, %v624_v9  ;;  %v612_v9 = vmul.f32 %v596_v48, %v2770_v4  ;;  %v639_v21 = vsel %vm526_vm1, %v611_v2, 0.0 }
 0x141   :  { %v643_v25 = vsel %vm526_vm1, %v613_v18, 0.0 }
 0x142   :  { %v628_v30 = vadd.f32 %v627_v28, %v626_v16  ;;  %v641_v22 = vsel %vm526_vm1, %v612_v9, 0.0 }
 0x144   :  { %v630_v42 = vadd.f32 %v629_v40, %v628_v30 }
 0x146   :  { %v632_v47 = vadd.f32 %v631_v46, %v630_v42  ;;  %v2874_v46 = vshrl.u32 %v203_v43, 7 }
 0x148   :  { %v634_v53 = vadd.f32 %v633_v52, %v632_v47  ;;  %v207_v47 = vadd.s32 24, %v2874_v46  ;;  %v205_v48 = vadd.s32 8, %v2874_v46  ;;  %v211_v51 = vadd.s32 56, %v2874_v46 }
 0x149   :  { %v209_v52 = vadd.s32 40, %v2874_v46  ;;  %v213_v9 = vadd.s32 72, %v2874_v46  ;;  %vm875_vm8 = vcmp.lt.s32.totalorder %v2874_v46, 7  ;;  %vm826_vm11 = vcmp.lt.s32.totalorder %v2874_v46, 1 }
 0x14a   :  { %v636_v8 = vadd.f32 %v635_v3, %v634_v53  ;;  %v245_v53 = vand.u32 15, %v207_v47  ;;  %v231_v2 = vand.u32 15, %v205_v48  ;;  %v273_v3 = vand.u32 15, %v211_v51 }
 0x14c   :  { %v638_v17 = vadd.f32 %v637_v11, %v636_v8  ;;  %v215_v8 = vadd.s32 88, %v2874_v46  ;;  %v2886_v11 = vsub.s32 0, %v2874_v46  ;;  %vm463_vm2 = vcmp.ne.s32.totalorder %v245_v53, 15 }
 0x14d   :  { %vm461_vm3 = vcmp.ne.s32.totalorder %v231_v2, 15  ;;  %vm467_vm4 = vcmp.ne.s32.totalorder %v273_v3, 15  ;;  %v2933_v53 = vadd.s32 120, %v2874_v46 }
 0x14e   :  { %v640_v16 = vadd.f32 %v639_v21, %v638_v17  ;;  %v259_v17 = vand.u32 15, %v209_v52 }
 0x150   :  { %v642_v23 = vadd.f32 %v641_v22, %v640_v16  ;;  %v509_v16 = vld [vmem:[%s3922_s4] sm:$0x1]  ;;  %v301_v22 = vand.u32 15, %v215_v8  ;;  %vm465_vm5 = vcmp.ne.s32.totalorder %v259_v17, 15 }
 0x152   :  { %v644_v28 = vadd.f32 %v643_v25, %v642_v23  ;;  %v287_v23 = vand.u32 15, %v213_v9  ;;  %vm2909_vm6 = vcmp.ne.s32.totalorder %v301_v22, 15 }
 0x153   :  { %v2950_v17 = vsel %vm2909_vm6, 1.0, %v3932_v27 }
 0x154   :  { %v645_v30 = vrot.slane %v644_v28, 4  ;;  %vm2913_vm7 = vcmp.ne.s32.totalorder %v287_v23, 15 }
 0x156   :  { %v646_v31 = vadd.f32 %v645_v30, %v644_v28 }
 0x158   :  { %v647_v32 = vrot.slane %v646_v31, 2 }
 0x15a   :  { %v648_v33 = vadd.f32 %v647_v32, %v646_v31  ;;  %v2896_v31 = vsel %vm463_vm2, 1.0, %v3932_v27  ;;  %v2899_v32 = vsel %vm461_vm3, 1.0, %v3932_v27  ;;  %vm1119_vm2 = vcmask 785408  }
 0x15b   :  { %3946 = vst [vmem:[#allocation3_spill] sm:$0xff] %v2896_v31  ;;  %3947 = vst [vmem:[#allocation4_spill] sm:$0xff] %v2899_v32 }
 0x15c   :  { %v649_v40 = vrot.slane %v648_v33, 1 }
 0x15e   :  { %v650_v42 = vadd.f32 %v649_v40, %v648_v33  ;;  %v2902_v33 = vsel %vm467_vm4, 1.0, %v3932_v27 }
 0x160   :  { %v651_v38 = vmul.f32 %v650_v42, %v2792_v36  ;;  %v2907_v42 = vsel %vm465_vm5, 1.0, %v3932_v27 }
 0x162   :  { %v652_v44 = vadd.f32 1e-05, %v651_v38 }
 0x164   :  { %2417 = vrsqrt.f32 %v652_v44 }
 0x16e   :  { %v2418_v18 = vpop.eup %2417 }
 0x16f   :  { %v654_v21 = vmul.f32 %v2418_v18, %v508_v0 }
 0x171   :  { %v655_v25 = vmul.f32 %v654_v21, %v2795_v37  ;;  %v2893_v28 = vrot.slane %v654_v21, %v2886_v11 }
 0x173   :  { %v656_v30 = vsub.f32 %v509_v16, %v655_v25  ;;  %v665_v40 = vmul.f32 %v2893_v28, %v2660_v1  ;;  %v666_v44 = vmul.f32 %v2893_v28, %v2669_v5  ;;  %v663_v1 = vmul.f32 %v2893_v28, %v2649_v61 }
 0x174   :  { %v664_v47 = vmul.f32 %v2893_v28, %v2642_v59  ;;  %v667_v48 = vmul.f32 %v2893_v28, %v2679_v10  ;;  %v669_v51 = vmul.f32 %v2893_v28, %v2697_v19  ;;  %v670_v52 = vmul.f32 %v2893_v28, %v2707_v24 }
 0x175   :  { %v2918_v43 = vrot.slane %v656_v30, %v2886_v11  ;;  %v668_v19 = vmul.f32 %v2893_v28, %v2689_v15  ;;  %v2944_v24 = vadd.s32 104, %v2874_v46  ;;  %v2956_v15 = vsel %vm2913_vm7, 1.0, %v3932_v27 }
 0x176   :  { %v671_v23 = vmul.f32 %v2893_v28, %v2717_v29  ;;  %vm2492_vm7 = vmmov 0  }
 0x177   :  { %v687_v5 = vadd.f32 %v2918_v43, %v665_v40  ;;  %v688_v0 = vadd.f32 %v2918_v43, %v666_v44  ;;  %v685_v61 = vadd.f32 %v2918_v43, %v663_v1  ;;  %v686_v59 = vadd.f32 %v2918_v43, %v664_v47 }
 0x178   :  { %v689_v2 = vadd.f32 %v2918_v43, %v667_v48  ;;  %v691_v10 = vadd.f32 %v2918_v43, %v669_v51  ;;  %v692_v9 = vadd.f32 %v2918_v43, %v670_v52  ;;  %v690_v16 = vadd.f32 %v2918_v43, %v668_v19 }
 0x179   :  { %v719_v3 = vmul.f32 0.70710677, %v687_v5  ;;  %v720_v8 = vmul.f32 0.70710677, %v688_v0  ;;  %v717_v18 = vmul.f32 0.70710677, %v685_v61  ;;  %v673_v40 = vmul.f32 %v2893_v28, %v2735_v39 }
 0x17a   :  { %v718_v21 = vmul.f32 0.70710677, %v686_v59  ;;  %v721_v22 = vmul.f32 0.70710677, %v689_v2  ;;  %v723_v30 = vmul.f32 0.70710677, %v691_v10  ;;  %v693_v38 = vadd.f32 %v2918_v43, %v671_v23 }
 0x17b   :  { %2419 = verf.f32 %v719_v3  ;;  %v724_v44 = vmul.f32 0.70710677, %v692_v9  ;;  %v674_v1 = vmul.f32 %v2893_v28, %v2745_v45  ;;  %v722_v47 = vmul.f32 0.70710677, %v690_v16 }
 0x17c   :  { %2421 = verf.f32 %v720_v8  ;;  %v695_v29 = vadd.f32 %v2918_v43, %v673_v40  ;;  %v672_v48 = vmul.f32 %v2893_v28, %v2725_v34  ;;  %v675_v39 = vmul.f32 %v2893_v28, %v2755_v50 }
 0x17d   :  { %2423 = verf.f32 %v717_v18  ;;  %v696_v51 = vadd.f32 %v2918_v43, %v674_v1  ;;  %v677_v52 = vmul.f32 %v2893_v28, %v2775_v7  ;;  %v703_v19 = vmul.f32 0.5, %v687_v5 }
 0x17e   :  { %2425 = verf.f32 %v718_v21  ;;  %v725_v3 = vmul.f32 0.70710677, %v693_v38  ;;  %v694_v45 = vadd.f32 %v2918_v43, %v672_v48  ;;  %v704_v8 = vmul.f32 0.5, %v688_v0 }
 0x17f   :  { %2427 = verf.f32 %v721_v22  ;;  %v727_v18 = vmul.f32 0.70710677, %v695_v29  ;;  %v2977_v21 = vadd.f32 %v2918_v43, %v675_v39  ;;  %v701_v34 = vmul.f32 0.5, %v685_v61  ;;  %v2407_v61 = vld [vmem:[%s3920_s5 + $0x20] sm:$0xff]  }
 0x180   :  { %2429 = verf.f32 %v723_v30  ;;  %v702_v22 = vmul.f32 0.5, %v686_v59  ;;  %v678_v50 = vmul.f32 %v2893_v28, %v2785_v14  ;;  %v705_v23 = vmul.f32 0.5, %v689_v2  ;;  %2163 = vmatprep.subr.bf16.mxu1 %v2407_v61 }
 0x181   :  { %2431 = verf.f32 %v724_v44  ;;  %v707_v40 = vmul.f32 0.5, %v691_v10  ;;  %v728_v7 = vmul.f32 0.70710677, %v696_v51  ;;  %v2982_v5 = vadd.f32 %v2918_v43, %v677_v52  ;;  %2164 = vmatpush3.bf16.msra.mxu1 %v2407_v61 }
 0x182   :  { %2433 = verf.f32 %v722_v47  ;;  %v708_v30 = vmul.f32 0.5, %v692_v9  ;;  %v726_v0 = vmul.f32 0.70710677, %v694_v45  ;;  %v2985_v44 = vadd.f32 %v2918_v43, %v678_v50 }
 0x183   :  { %2435 = verf.f32 %v725_v3  ;;  %v706_v1 = vmul.f32 0.5, %v690_v16  ;;  %v2990_v47 = vmul.f32 0.5, %v693_v38  ;;  %v729_v14 = vmul.f32 0.70710677, %v2977_v21 }
 0x184   :  { %2437 = verf.f32 %v727_v18  ;;  %v2994_v9 = vmul.f32 0.5, %v695_v29  ;;  %v731_v48 = vmul.f32 0.70710677, %v2982_v5  ;;  %v676_v39 = vmul.f32 %v2893_v28, %v2765_v63 }
 0x185   :  { %v2420_v59 = vpop.eup %2419  ;;  %v2999_v16 = vmul.f32 0.5, %v696_v51  ;;  %2439 = verf.f32 %v728_v7  ;;  %v732_v38 = vmul.f32 0.70710677, %v2985_v44  ;;  %v3005_v63 = vmul.f32 0.5, %v694_v45 }
 0x186   :  { %v2422_v2 = vpop.eup %2421  ;;  %v751_v10 = vadd.f32 1.0, %v2420_v59  ;;  %2441 = verf.f32 %v726_v0  ;;  %v3003_v29 = vadd.f32 %v2918_v43, %v676_v39 }
 0x187   :  { %v2424_v52 = vpop.eup %2423  ;;  %v752_v3 = vadd.f32 1.0, %v2422_v2  ;;  %2443 = verf.f32 %v729_v14 }
 0x188   :  { %v2426_v18 = vpop.eup %2425  ;;  %v767_v50 = vmul.f32 %v751_v10, %v703_v19  ;;  %v749_v59 = vadd.f32 1.0, %v2424_v52  ;;  %2445 = verf.f32 %v731_v48  ;;  %v730_v39 = vmul.f32 0.70710677, %v3003_v29 }
 0x189   :  { %v2428_v27 = vpop.eup %2427  ;;  %v768_v37 = vmul.f32 %v752_v3, %v704_v8  ;;  %v750_v25 = vadd.f32 1.0, %v2426_v18  ;;  %2447 = verf.f32 %v732_v38 }
 0x18a   :  { %v2430_v28 = vpop.eup %2429  ;;  %v3008_v51 = vmul.f32 %v767_v50, %v2633_v56  ;;  %v765_v7 = vmul.f32 %v749_v59, %v701_v34  ;;  %v753_v2 = vadd.f32 1.0, %v2428_v27  ;;  %2449 = verf.f32 %v730_v39 }
 0x18b   :  { %v2432_v61 = vpop.eup %2431  ;;  %v3011_v19 = vmul.f32 %v768_v37, %v2635_v57  ;;  %v766_v0 = vmul.f32 %v750_v25, %v702_v22  ;;  %v755_v43 = vadd.f32 1.0, %v2430_v28  ;;  %v2408_v25 = vld [vmem:[%s3920_s5 + $0x28] sm:$0xff]   ;;  %v713_v28 = vmul.f32 0.5, %v2977_v21  ;;  %s2491_s5 = smov 64  }
 0x18c   :  { %v2434_v10 = vpop.eup %2433  ;;  %v3014_v8 = vmul.f32 %v765_v7, %v2644_v60  ;;  %v769_v45 = vmul.f32 %v753_v2, %v705_v23  ;;  %v756_v14 = vadd.f32 1.0, %v2432_v61  ;;  %v861_v37 = vrot.slane %v3008_v51, 1  ;;  %2165 = vmatprep.subr.bf16.mxu1 %v2408_v25 }
 0x18d   :  { %v2248_v34 = vpack.i.bf16 %v3011_v19, %v3008_v51  ;;  %v3020_v27 = vmul.f32 %v766_v0, %v2631_v55  ;;  %v771_v48 = vmul.f32 %v755_v43, %v707_v40  ;;  %v2436_v22 = vpop.eup %2435  ;;  %v862_v23 = vrot.slane %v3011_v19, 1  ;;  %2166 = vmatpush3.bf16.msra.mxu1 %v2408_v25 }
 0x18e   :  { %v3027_v52 = vmul.f32 %v769_v45, %v2637_v58  ;;  %v772_v3 = vmul.f32 %v756_v14, %v708_v30  ;;  %v754_v38 = vadd.f32 1.0, %v2434_v10  ;;  %v2438_v18 = vpop.eup %2437  ;;  %v3936_v40 = vrot.slane %v3014_v8, 1 }
 0x18f   :  { %2249 = vrot.lane.b32.xlu0 %v2248_v34, %s2490_s18  ;;  %v2243_v50 = vpack.i.bf16 %v3020_v27, %v3014_v8  ;;  %v860_v59 = vrot.slane %v3020_v27, 1  ;;  %v3038_v2 = vmul.f32 %v771_v48, %v2671_v6  ;;  %v715_v61 = vmul.f32 0.5, %v2982_v5  ;;  %v2440_v0 = vpop.eup %2439 }
 0x190   :  { %v863_v7 = vrot.slane %v3027_v52, 1  ;;  %v770_v30 = vmul.f32 %v754_v38, %v706_v1  ;;  %v3045_v10 = vmul.f32 %v772_v3, %v2681_v12  ;;  %v757_v21 = vadd.f32 1.0, %v2436_v22  ;;  %v2442_v45 = vpop.eup %2441 }
 0x191   :  { %2244 = vrot.lane.b32.xlu1 %v2243_v50, %s2490_s18  ;;  %v889_v43 = vsel %vm875_vm8, %v860_v59, %v861_v37  ;;  %v759_v34 = vadd.f32 1.0, %v2438_v18  ;;  %v3952_v48 = vand.u32 15, %v2933_v53  ;;  %v2444_v3 = vpop.eup %2443  ;;  %v890_v39 = vsel %vm875_vm8, %v3936_v40, %v860_v59 }
 0x192   :  { %v887_v14 = vsel %vm875_vm8, %v862_v23, %v863_v7  ;;  %v893_v1 = vmul.f32 %v2899_v32, %v889_v43  ;;  %v3051_v5 = vmul.f32 %v770_v30, %v2651_v62  ;;  %v773_v38 = vmul.f32 %v757_v21, %v2990_v47  ;;  %v2446_v30 = vpop.eup %2445 }
 0x193   :  { %vm3055_vm9 = vcmp.ne.s32.totalorder %v3952_v48, 15  ;;  %v895_v22 = vmul.f32 %v2896_v31, %v887_v14  ;;  %v865_v50 = vrot.slane %v3038_v2, 1  ;;  %v888_v53 = vsel %vm875_vm8, %v861_v37, %v862_v23  ;;  %v2448_v32 = vpop.eup %2447 }
 0x194   :  { %v2253_v18 = vpack.i.bf16 %v893_v1, %v890_v39  ;;  %v864_v43 = vrot.slane %v3051_v5, 1  ;;  %v716_v48 = vmul.f32 0.5, %v2985_v44  ;;  %v3071_v31 = vmul.f32 %v773_v38, %v2699_v20 }
 0x195   :  { %v2263_v14 = vpack.i.bf16 %v895_v22, %v888_v53  ;;  %v866_v59 = vrot.slane %v3045_v10, 1  ;;  %v760_v40 = vadd.f32 1.0, %v2440_v0  ;;  %v2258_v47 = vpack.i.bf16 %v3051_v5, %v3027_v52 }
 0x196   :  { %2254 = vrot.lane.b32.xlu1 %v2253_v18, %s2491_s5  ;;  %v885_v37 = vsel %vm875_vm8, %v864_v43, %v865_v50  ;;  %v775_v23 = vmul.f32 %v759_v34, %v2994_v9  ;;  %v758_v44 = vadd.f32 1.0, %v2442_v45  ;;  %v867_v21 = vrot.slane %v3071_v31, 1 }
 0x197   :  { %2264 = vrot.lane.b32.xlu0 %v2263_v14, %s2491_s5  ;;  %v897_v1 = vmul.f32 %v2907_v42, %v885_v37  ;;  %v776_v0 = vmul.f32 %v760_v40, %v2999_v16  ;;  %v761_v22 = vadd.f32 1.0, %v2444_v3  ;;  %v3955_v39 = vand.u32 15, %v2944_v24 }
 0x198   :  { %v3091_v53 = vmul.f32 %v775_v23, %v2727_v35  ;;  %v774_v9 = vmul.f32 %v758_v44, %v3005_v63  ;;  %v763_v45 = vadd.f32 1.0, %v2446_v30  ;;  %v764_v34 = vadd.f32 1.0, %v2448_v32  ;;  %v2450_v30 = vpop.eup %2449 }
 0x199   :  { %vm3086_vm10 = vcmp.ne.s32.totalorder %v3955_v39, 15  ;;  %v2268_v18 = vpack.i.bf16 %v3045_v10, %v3038_v2  ;;  %v883_v16 = vsel %vm875_vm8, %v866_v59, %v867_v21  ;;  %v3099_v40 = vmul.f32 %v776_v0, %v2737_v41 }
 0x19a   :  { %v777_v24 = vmul.f32 %v761_v22, %v713_v28  ;;  %2259 = vrot.lane.b32.xlu1 %v2258_v47, %s2490_s18  ;;  %v899_v3 = vmul.f32 %v2902_v33, %v883_v16  ;;  %v3104_v14 = vmul.f32 %v774_v9, %v2709_v26  ;;  %v869_v63 = vrot.slane %v3091_v53, 1 }
 0x19b   :  { %v779_v32 = vmul.f32 %v763_v45, %v715_v61  ;;  %2269 = vrot.lane.b32.xlu0 %v2268_v18, %s2490_s18  ;;  %v886_v37 = vsel %vm875_vm8, %v863_v7, %v864_v43  ;;  %v870_v28 = vrot.slane %v3099_v40, 1  ;;  %v780_v47 = vmul.f32 %v764_v34, %v716_v48 }
 0x19c   :  { %v3111_v23 = vmul.f32 %v777_v24, %v2750_v49  ;;  %v884_v44 = vsel %vm875_vm8, %v865_v50, %v866_v59  ;;  %v2273_v0 = vpack.i.bf16 %v897_v1, %v886_v37  ;;  %v868_v22 = vrot.slane %v3104_v14, 1 }
 0x19d   :  { %v2283_v61 = vpack.i.bf16 %v899_v3, %v884_v44  ;;  %v714_v9 = vmul.f32 0.5, %v3003_v29  ;;  %v3958_v7 = vmov 0.0   ;;  %v3129_v48 = vmul.f32 %v779_v32, %v2770_v4 }
 0x19e   :  { %v871_v39 = vrot.slane %v3111_v23, 1  ;;  %v3123_v43 = vsel %vm3055_vm9, 1.0, %v3958_v7  ;;  %2274 = vrot.lane.b32.xlu1 %v2273_v0, %s2491_s5  ;;  %v881_v50 = vsel %vm875_vm8, %v868_v22, %v869_v63  ;;  %v809_v59 = vmul.f32 %v780_v47, %v2780_v13 }
 0x19f   :  { %3959 = vst [vmem:[#allocation5_spill] sm:$0xff] %v3123_v43  ;;  %v762_v1 = vadd.f32 1.0, %v2450_v30  ;;  %v811_v45 = vrot.slane %v3020_v27, 7  ;;  %v815_v29 = vrot.slane %v3051_v5, 7  ;;  %2284 = vrot.lane.b32.xlu0 %v2283_v61, %s2491_s5  ;;  %v813_v34 = vrot.slane %v3011_v19, 7 }
 0x1a0   :  { %v879_v25 = vsel %vm875_vm8, %v870_v28, %v871_v39  ;;  %v2288_v18 = vpack.i.bf16 %v3099_v40, %v3091_v53  ;;  %v2278_v16 = vpack.i.bf16 %v3104_v14, %v3071_v31  ;;  %v901_v24 = vmul.f32 %v2956_v15, %v881_v50 }
 0x1a1   :  { %v778_v27 = vmul.f32 %v762_v1, %v714_v9  ;;  %v903_v5 = vmul.f32 %v2950_v17, %v879_v25  ;;  %v812_v3 = vrot.slane %v3008_v51, 7  ;;  %v816_v32 = vrot.slane %v3038_v2, 7 }
 0x1a2   :  { %v817_v30 = vrot.slane %v3045_v10, 7  ;;  %2279 = vrot.lane.b32.xlu1 %v2278_v16, %s2490_s18  ;;  %v873_v37 = vrot.slane %v3129_v48, 1  ;;  %v874_v47 = vrot.slane %v809_v59, 1  ;;  %v3155_v44 = vsel %vm3086_vm10, 1.0, %v3958_v7 }
 0x1a3   :  { %v807_v19 = vmul.f32 %v778_v27, %v2760_v54  ;;  %3960 = vst [vmem:[#allocation6_spill] sm:$0xff] %v3155_v44  ;;  %2289 = vrot.lane.b32.xlu0 %v2288_v18, %s2490_s18  ;;  %v882_v51 = vsel %vm875_vm8, %v867_v21, %v868_v22  ;;  %v3162_v2 = vsel %vm826_vm11, %v812_v3, %v813_v34  ;;  %v825_v9 = vrot.slane %v809_v59, 7 }
 0x1a4   :  { %v3166_v10 = vsel %vm826_vm11, %v811_v45, %v812_v3  ;;  %v3170_v0 = vsel %vm826_vm11, %v816_v32, %v817_v30  ;;  %v880_v38 = vsel %vm875_vm8, %v869_v63, %v870_v28  ;;  %v2293_v61 = vpack.i.bf16 %v901_v24, %v882_v51 }
 0x1a5   :  { %v872_v50 = vrot.slane %v807_v19, 1  ;;  %v2303_v1 = vpack.i.bf16 %v903_v5, %v880_v38  ;;  %v3176_v21 = vsel %vm826_vm11, %v815_v29, %v816_v32  ;;  %v814_v22 = vrot.slane %v3027_v52, 7 }
 0x1a6   :  { %v810_v25 = vrot.slane %v3014_v8, 7  ;;  %v819_v18 = vrot.slane %v3104_v14, 7  ;;  %2294 = vrot.lane.b32.xlu1 %v2293_v61, %s2491_s5  ;;  %v823_v16 = vrot.slane %v807_v19, 7  ;;  %v3961_v27 = vrot.slane %v3014_v8, 1 }
 0x1a7   :  { %v877_v28 = vsel %vm875_vm8, %v872_v50, %v873_v37  ;;  %2304 = vrot.lane.b32.xlu0 %v2303_v1, %s2491_s5  ;;  %v2298_v24 = vpack.i.bf16 %v807_v19, %v3111_v23  ;;  %v3192_v52 = vsel %vm826_vm11, %v814_v22, %v815_v29  ;;  %v3196_v14 = vsel %vm826_vm11, %v813_v34, %v814_v22 }
 0x1a8   :  { %v891_v63 = vsel %vm875_vm8, %v874_v47, %v3961_v27  ;;  %v841_v8 = vsel %vm826_vm11, %v810_v25, %v811_v45  ;;  %v905_v5 = vmul.f32 %v3155_v44, %v877_v28  ;;  %v842_v3 = vsel %vm826_vm11, %v825_v9, %v810_v25 }
 0x1a9   :  { %v820_v32 = vrot.slane %v3091_v53, 7  ;;  %v821_v19 = vrot.slane %v3099_v40, 7  ;;  %v2308_v51 = vpack.i.bf16 %v809_v59, %v3129_v48  ;;  %v907_v29 = vmul.f32 %v3123_v43, %v891_v63 }
 0x1aa   :  { %v818_v38 = vrot.slane %v3071_v31, 7  ;;  %v824_v34 = vrot.slane %v3129_v48, 7  ;;  %2299 = vrot.lane.b32.xlu1 %v2298_v24, %s2490_s18  ;;  %v876_v45 = vsel %vm875_vm8, %v873_v37, %v874_v47  ;;  %v822_v40 = vrot.slane %v3111_v23, 7 }
 0x1ab   :  { %v3214_v61 = vsel %vm826_vm11, %v820_v32, %v821_v19  ;;  %v3218_v53 = vsel %vm826_vm11, %v819_v18, %v820_v32  ;;  %2309 = vrot.lane.b32.xlu0 %v2308_v51, %s2490_s18  ;;  %v878_v31 = vsel %vm875_vm8, %v871_v39, %v872_v50  ;;  %v2318_v50 = vpack.i.bf16 %v907_v29, %v876_v45 }
 0x1ac   :  { %v3228_v48 = vsel %vm826_vm11, %v818_v38, %v819_v18  ;;  %v3232_v59 = vsel %vm826_vm11, %v817_v30, %v818_v38  ;;  %v3236_v37 = vsel %vm826_vm11, %v824_v34, %v825_v9  ;;  %v2313_v47 = vpack.i.bf16 %v905_v5, %v878_v31 }
 0x1ad   :  { %v3240_v1 = vsel %vm826_vm11, %v823_v16, %v824_v34  ;;  %v3244_v23 = vsel %vm826_vm11, %v822_v40, %v823_v16  ;;  %v3248_v39 = vsel %vm826_vm11, %v821_v19, %v822_v40  ;;  %v206_v30 = vadd.s32 16, %v2874_v46 }
 0x1ae   :  { %2314 = vrot.lane.b32.xlu1 %v2313_v47, %s2491_s5  ;;  %v224_v9 = vand.u32 15, %v2874_v46  ;;  %v210_v25 = vadd.s32 48, %v2874_v46  ;;  %v208_v18 = vadd.s32 32, %v2874_v46  ;;  %v214_v34 = vadd.s32 80, %v2874_v46 }
 0x1af   :  { %2319 = vrot.lane.b32.xlu0 %v2318_v50, %s2491_s5  ;;  %v238_v22 = vand.u32 15, %v206_v30  ;;  %v212_v47 = vadd.s32 64, %v2874_v46  ;;  %v218_v38 = vadd.s32 112, %v2874_v46 }
 0x1b0   :  { %vm412_vm12 = vcmp.ne.s32.totalorder %v224_v9, 0  ;;  %v266_v63 = vand.u32 15, %v210_v25  ;;  %v252_v28 = vand.u32 15, %v208_v18 }
 0x1b1   :  { %vm414_vm13 = vcmp.ne.s32.totalorder %v238_v22, 0  ;;  %v3257_v24 = vsel %vm412_vm12, 1.0, %v3958_v7 }
 0x1b2   :  { %3962 = vst [vmem:[#allocation7_spill] sm:$0xff] %v3257_v24  ;;  %v3260_v5 = vsel %vm414_vm13, 1.0, %v3958_v7  ;;  %vm3262_vm14 = vcmp.ne.s32.totalorder %v266_v63, 0  ;;  %vm3267_vm0 = vcmp.ne.s32.totalorder %v252_v28, 0  ;;  %v843_v31 = vmul.f32 %v3257_v24, %v842_v3 }
 0x1b3   :  { %3963 = vst [vmem:[#allocation8_spill] sm:$0xff] %v3260_v5  ;;  %v845_v50 = vmul.f32 %v3260_v5, %v3166_v10 }
 0x201   :  { %v2250_v16 = vpop.permute.xlu0 %2249 }
 0x202   :  { %v2252_v51 = vunpack.i.h.bf16 %v2250_v16  ;;  %v2251_v29 = vunpack.i.l.bf16 %v2250_v16 }
 0x203   :  { %v2245_v27 = vpop.permute.xlu1 %2244 }
 0x204   :  { %v2247_v32 = vunpack.i.h.bf16 %v2245_v27  ;;  %v2246_v19 = vunpack.i.l.bf16 %v2245_v27  ;;  %v1038_v63 = vsel %vm526_vm1, %v845_v50, %v2251_v29  ;;  %v1039_v3 = vsel %vm526_vm1, %v3162_v2, %v2252_v51 }
 0x205   :  { %v3292_v2 = vsel %vm3262_vm14, 1.0, %v3958_v7 }
 0x206   :  { %v1036_v16 = vsel %vm526_vm1, %v843_v31, %v2246_v19  ;;  %v1037_v27 = vsel %vm526_vm1, %v841_v8, %v2247_v32  ;;  %v3287_v8 = vsel %vm3267_vm0, 1.0, %v3958_v7  ;;  %v280_v32 = vand.u32 15, %v212_v47 }
 0x207   :  { %v216_v47 = vadd.s32 96, %v2874_v46 }
 0x208   :  { %v2255_v45 = vpop.permute.xlu1 %2254  ;;  %vm3306_vm4 = vcmp.ne.s32.totalorder %v280_v32, 0 }
 0x209   :  { %v2265_v30 = vpop.permute.xlu0 %2264  ;;  %v2257_v9 = vunpack.i.h.bf16 %v2255_v45  ;;  %v2256_v22 = vunpack.i.l.bf16 %v2255_v45 }
 0x20a   :  { %v2267_v25 = vunpack.i.h.bf16 %v2265_v30  ;;  %v2266_v18 = vunpack.i.l.bf16 %v2265_v30  ;;  %v294_v30 = vand.u32 15, %v214_v34  ;;  %v847_v34 = vmul.f32 %v3287_v8, %v3196_v14 }
 0x20b   :  { %v1053_v28 = vsel %vm1052_vm15, %v1036_v16, %v2256_v22  ;;  %v1054_v24 = vsel %vm1052_vm15, %v1037_v27, %v2257_v9 }
 0x20c   :  { %v1055_v10 = vsel %vm1052_vm15, %v1038_v63, %v2266_v18  ;;  %v1056_v45 = vsel %vm1052_vm15, %v1039_v3, %v2267_v25  ;;  %v2260_v5 = vpop.permute.xlu1 %2259  ;;  %v1069_v43 = vpack.c.bf16 %v1054_v24, %v1053_v28  ;;  %vm3298_vm3 = vcmp.ne.s32.totalorder %v294_v30, 0 }
 0x20d   :  { %v1070_v44 = vpack.c.bf16 %v1056_v45, %v1055_v10  ;;  %v2270_v19 = vpop.permute.xlu0 %2269  ;;  %v2262_v51 = vunpack.i.h.bf16 %v2260_v5  ;;  %v2261_v29 = vunpack.i.l.bf16 %v2260_v5  ;;  %v849_v5 = vmul.f32 %v3292_v2, %v3176_v21 }
 0x20e   :  { %2167 = vmatprep.mubr.msk.bf16.mxu1 %vm1119_vm2, %v1069_v43  ;;  %v2272_v31 = vunpack.i.h.bf16 %v2270_v19  ;;  %v2271_v24 = vunpack.i.l.bf16 %v2270_v19 }
 0x20f   :  { %2168 = vmatmul.mubr.msk.bf16.vlgmr.msra.gmra.mrb[0].mxu1 %vm1119_vm2, %v1070_v44  ;;  %v1041_v14 = vsel %vm526_vm1, %v3192_v52, %v2262_v51  ;;  %v1040_v25 = vsel %vm526_vm1, %v847_v34, %v2261_v29  ;;  %v322_v52 = vand.u32 15, %v218_v38  ;;  %v3323_v51 = vsel %vm3306_vm4, 1.0, %v3958_v7 }
 0x210   :  { %v2275_v40 = vpop.permute.xlu1 %2274  ;;  %v1043_v27 = vsel %vm526_vm1, %v3170_v0, %v2272_v31  ;;  %v1042_v63 = vsel %vm526_vm1, %v849_v5, %v2271_v24  ;;  %v308_v0 = vand.u32 15, %v216_v47  ;;  %v3328_v29 = vsel %vm3298_vm3, 1.0, %v3958_v7 }
 0x211   :  { %v2285_v43 = vpop.permute.xlu0 %2284  ;;  %v2277_v9 = vunpack.i.h.bf16 %v2275_v40  ;;  %v2276_v22 = vunpack.i.l.bf16 %v2275_v40  ;;  %3972 = vst [vmem:[#allocation9_spill] sm:$0xff] %v3328_v29  ;;  %v851_v38 = vmul.f32 %v3323_v51, %v3232_v59  ;;  %vm3334_vm5 = vcmp.ne.s32.totalorder %v322_v52, 0 }
 0x212   :  { %v2287_v18 = vunpack.i.h.bf16 %v2285_v43  ;;  %v2286_v16 = vunpack.i.l.bf16 %v2285_v43  ;;  %v853_v50 = vmul.f32 %v3328_v29, %v3218_v53  ;;  %vm424_vm6 = vcmp.ne.s32.totalorder %v308_v0, 0 }
 0x213   :  { %v1057_v21 = vsel %vm1052_vm15, %v1040_v25, %v2276_v22  ;;  %v1058_v3 = vsel %vm1052_vm15, %v1041_v14, %v2277_v9 }
 0x214   :  { %v1059_v28 = vsel %vm1052_vm15, %v1042_v63, %v2286_v16  ;;  %v1060_v10 = vsel %vm1052_vm15, %v1043_v27, %v2287_v18  ;;  %v1071_v45 = vpack.c.bf16 %v1058_v3, %v1057_v21  ;;  %v2280_v30 = vpop.permute.xlu1 %2279 }
 0x215   :  { %v1072_v19 = vpack.c.bf16 %v1060_v10, %v1059_v28  ;;  %v2290_v32 = vpop.permute.xlu0 %2289  ;;  %v2282_v31 = vunpack.i.h.bf16 %v2280_v30  ;;  %v2281_v24 = vunpack.i.l.bf16 %v2280_v30 }
 0x216   :  { %2171 = vmatprep.mubr.msk.bf16.mxu1 %vm1119_vm2, %v1071_v45  ;;  %v2292_v34 = vunpack.i.h.bf16 %v2290_v32  ;;  %v2291_v40 = vunpack.i.l.bf16 %v2290_v32  ;;  %v3351_v45 = vsel %vm424_vm6, 1.0, %v3958_v7 }
 0x217   :  { %2172 = vmatmul.mubr.msk.bf16.gmra.mrb[4].mxu1 %vm1119_vm2, %v1072_v19  ;;  %v1045_v44 = vsel %vm526_vm1, %v3228_v48, %v2282_v31  ;;  %v1044_v14 = vsel %vm526_vm1, %v851_v38, %v2281_v24  ;;  %3975 = vst [vmem:[#allocation10_spill] sm:$0xff] %v3351_v45  ;;  %v855_v0 = vmul.f32 %v3351_v45, %v3248_v39 }
 0x218   :  { %v2295_v5 = vpop.permute.xlu1 %2294  ;;  %v1047_v59 = vsel %vm526_vm1, %v3214_v61, %v2292_v34  ;;  %v1046_v16 = vsel %vm526_vm1, %v853_v50, %v2291_v40  ;;  %v3356_v61 = vsel %vm3334_vm5, 1.0, %v3958_v7 }
 0x219   :  { %v2305_v47 = vpop.permute.xlu0 %2304  ;;  %v2297_v9 = vunpack.i.h.bf16 %v2295_v5  ;;  %v2296_v22 = vunpack.i.l.bf16 %v2295_v5  ;;  %3976 = vst [vmem:[#allocation11_spill] sm:$0xff] %v3356_v61  ;;  %v857_v24 = vmul.f32 %v3356_v61, %v3240_v1 }
 0x21a   :  { %v2307_v25 = vunpack.i.h.bf16 %v2305_v47  ;;  %v2306_v18 = vunpack.i.l.bf16 %v2305_v47 }
 0x21b   :  { %v1061_v27 = vsel %vm1052_vm15, %v1044_v14, %v2296_v22  ;;  %v1062_v53 = vsel %vm1052_vm15, %v1045_v44, %v2297_v9 }
 0x21c   :  { %v1063_v63 = vsel %vm1052_vm15, %v1046_v16, %v2306_v18  ;;  %v1064_v21 = vsel %vm1052_vm15, %v1047_v59, %v2307_v25  ;;  %v1073_v3 = vpack.c.bf16 %v1062_v53, %v1061_v27  ;;  %v2300_v28 = vpop.permute.xlu1 %2299 }
 0x21d   :  { %v1074_v48 = vpack.c.bf16 %v1064_v21, %v1063_v63  ;;  %v2310_v10 = vpop.permute.xlu0 %2309  ;;  %v2302_v30 = vunpack.i.h.bf16 %v2300_v28  ;;  %v2301_v52 = vunpack.i.l.bf16 %v2300_v28 }
 0x21e   :  { %2175 = vmatprep.mubr.msk.bf16.mxu1 %vm1119_vm2, %v1073_v3  ;;  %v2312_v19 = vunpack.i.h.bf16 %v2310_v10  ;;  %v2311_v32 = vunpack.i.l.bf16 %v2310_v10 }
 0x21f   :  { %2176 = vmatmul.mubr.msk.bf16.gmra.mrb[8].mxu1 %vm1119_vm2, %v1074_v48  ;;  %v1049_v5 = vsel %vm526_vm1, %v3244_v23, %v2302_v30  ;;  %v1048_v43 = vsel %vm526_vm1, %v855_v0, %v2301_v52 }
 0x220   :  { %v2315_v31 = vpop.permute.xlu1 %2314  ;;  %v1051_v9 = vsel %vm526_vm1, %v3236_v37, %v2312_v19  ;;  %v1050_v22 = vsel %vm526_vm1, %v857_v24, %v2311_v32  ;;  %v3379_v37 = vld [vmem:[%s3923_s6] ss:$0 sm:$0xff] }
 0x221   :  { %v2320_v34 = vpop.permute.xlu0 %2319  ;;  %v2317_v40 = vunpack.i.h.bf16 %v2315_v31  ;;  %v2316_v38 = vunpack.i.l.bf16 %v2315_v31 }
 0x222   :  { %v2322_v50 = vunpack.i.h.bf16 %v2320_v34  ;;  %v2321_v47 = vunpack.i.l.bf16 %v2320_v34 }
 0x223   :  { %v1065_v39 = vsel %vm1052_vm15, %v1048_v43, %v2316_v38  ;;  %v1066_v44 = vsel %vm1052_vm15, %v1049_v5, %v2317_v40 }
 0x224   :  { %v1068_v1 = vsel %vm1052_vm15, %v1051_v9, %v2322_v50  ;;  %v1067_v14 = vsel %vm1052_vm15, %v1050_v22, %v2321_v47  ;;  %v1075_v25 = vpack.c.bf16 %v1066_v44, %v1065_v39 }
 0x225   :  { %v1076_v18 = vpack.c.bf16 %v1068_v1, %v1067_v14 }
 0x226   :  { %2179 = vmatprep.mubr.msk.bf16.mxu1 %vm1119_vm2, %v1075_v25 }
 0x227   :  { %2180 = vmatmul.mubr.msk.bf16.gmra.mrb[12].mxu1 %vm1119_vm2, %v1076_v18 }
 0x2e2   :  { %v2169_v23 = vpop.f32.mrb[0].mxu1 }
 0x2e3   :  { %v1178_v59 = vpop.f32.mrb[1].mxu1  ;;  %v3382_v16 = vadd.f32 %v2169_v23, %v3379_v37 }
 0x2e4   :  { %v3385_v27 = vadd.f32 %v3379_v37, %v1178_v59  ;;  %v2170_v53 = vpop.f32.mrb[2].mxu1 }
 0x2e5   :  { %v1181_v63 = vpop.f32.mrb[3].mxu1  ;;  %v3390_v3 = vadd.f32 %v2170_v53, %v3379_v37  ;;  %v1245_v48 = vmul.f32 %v3382_v16, %v2633_v56 }
 0x2e6   :  { %v1243_v21 = vmul.f32 %v3385_v27, %v2644_v60  ;;  %v3393_v28 = vadd.f32 %v3379_v37, %v1181_v63 }
 0x2e7   :  { %v1246_v52 = vmul.f32 %v3390_v3, %v2635_v57  ;;  %v1262_v24 = vsel %vm526_vm1, %v1245_v48, 0.0 }
 0x2e8   :  { %v1244_v10 = vmul.f32 %v3393_v28, %v2631_v55  ;;  %v1259_v30 = vsel %vm526_vm1, %v1243_v21, 0.0 }
 0x2e9   :  { %v1264_v50 = vsel %vm526_vm1, %v1246_v52, 0.0 }
 0x2ea   :  { %v1260_v19 = vsel %vm526_vm1, %v1244_v10, 0.0  ;;  %v2173_v32 = vpop.f32.mrb[4].mxu1 }
 0x2eb   :  { %v1261_v0 = vadd.f32 %v1260_v19, %v1259_v30  ;;  %v1194_v31 = vpop.f32.mrb[5].mxu1  ;;  %v3405_v34 = vadd.f32 %v2173_v32, %v3379_v37 }
 0x2ec   :  { %v3408_v40 = vadd.f32 %v3379_v37, %v1194_v31  ;;  %v2174_v38 = vpop.f32.mrb[6].mxu1 }
 0x2ed   :  { %v1263_v5 = vadd.f32 %v1262_v24, %v1261_v0  ;;  %v1197_v43 = vpop.f32.mrb[7].mxu1  ;;  %v3414_v9 = vadd.f32 %v2174_v38, %v3379_v37  ;;  %v1249_v44 = vmul.f32 %v3405_v34, %v2671_v6 }
 0x2ee   :  { %v1247_v47 = vmul.f32 %v3408_v40, %v2637_v58  ;;  %v3417_v22 = vadd.f32 %v3379_v37, %v1197_v43 }
 0x2ef   :  { %v1265_v39 = vadd.f32 %v1264_v50, %v1263_v5  ;;  %v1250_v18 = vmul.f32 %v3414_v9, %v2681_v12  ;;  %v1270_v21 = vsel %vm526_vm1, %v1249_v44, 0.0 }
 0x2f0   :  { %v1266_v1 = vsel %vm526_vm1, %v1247_v47, 0.0  ;;  %v1248_v14 = vmul.f32 %v3417_v22, %v2651_v62 }
 0x2f1   :  { %v1267_v25 = vadd.f32 %v1266_v1, %v1265_v39  ;;  %v1272_v32 = vsel %vm526_vm1, %v1250_v18, 0.0 }
 0x2f2   :  { %v1268_v23 = vsel %vm526_vm1, %v1248_v14, 0.0  ;;  %v2177_v59 = vpop.f32.mrb[8].mxu1 }
 0x2f3   :  { %v1269_v53 = vadd.f32 %v1268_v23, %v1267_v25  ;;  %v1210_v63 = vpop.f32.mrb[9].mxu1  ;;  %v3429_v48 = vadd.f32 %v2177_v59, %v3379_v37 }
 0x2f4   :  { %v3432_v10 = vadd.f32 %v3379_v37, %v1210_v63  ;;  %v2178_v30 = vpop.f32.mrb[10].mxu1 }
 0x2f5   :  { %v1271_v52 = vadd.f32 %v1270_v21, %v1269_v53  ;;  %v1213_v19 = vpop.f32.mrb[11].mxu1  ;;  %v3438_v31 = vadd.f32 %v2178_v30, %v3379_v37  ;;  %v1253_v5 = vmul.f32 %v3429_v48, %v2727_v35 }
 0x2f6   :  { %v1251_v0 = vmul.f32 %v3432_v10, %v2699_v20  ;;  %v3441_v24 = vadd.f32 %v3379_v37, %v1213_v19 }
 0x2f7   :  { %v1273_v38 = vadd.f32 %v1272_v32, %v1271_v52  ;;  %v1254_v39 = vmul.f32 %v3438_v31, %v2737_v41  ;;  %v1278_v18 = vsel %vm526_vm1, %v1253_v5, 0.0 }
 0x2f8   :  { %v1274_v43 = vsel %vm526_vm1, %v1251_v0, 0.0  ;;  %v1252_v50 = vmul.f32 %v3441_v24, %v2709_v26 }
 0x2f9   :  { %v1275_v47 = vadd.f32 %v1274_v43, %v1273_v38  ;;  %v1280_v30 = vsel %vm526_vm1, %v1254_v39, 0.0 }
 0x2fa   :  { %v1276_v44 = vsel %vm526_vm1, %v1252_v50, 0.0  ;;  %v2181_v1 = vpop.f32.mrb[12].mxu1 }
 0x2fb   :  { %v1277_v14 = vadd.f32 %v1276_v44, %v1275_v47  ;;  %v1226_v25 = vpop.f32.mrb[13].mxu1  ;;  %v3453_v23 = vadd.f32 %v2181_v1, %v3379_v37 }
 0x2fc   :  { %v3456_v59 = vadd.f32 %v3379_v37, %v1226_v25  ;;  %v2182_v53 = vpop.f32.mrb[14].mxu1 }
 0x2fd   :  { %v1279_v63 = vadd.f32 %v1278_v18, %v1277_v14  ;;  %v1229_v21 = vpop.f32.mrb[15].mxu1  ;;  %v3462_v19 = vadd.f32 %v2182_v53, %v3379_v37  ;;  %v1257_v38 = vmul.f32 %v3453_v23, %v2770_v4 }
 0x2fe   :  { %v1255_v52 = vmul.f32 %v3456_v59, %v2750_v49  ;;  %v3465_v32 = vadd.f32 %v3379_v37, %v1229_v21 }
 0x2ff   :  { %v1281_v0 = vadd.f32 %v1280_v30, %v1279_v63  ;;  %v1258_v47 = vmul.f32 %v3462_v19, %v2780_v13  ;;  %v1286_v1 = vsel %vm526_vm1, %v1257_v38, 0.0 }
 0x300   :  { %v1282_v5 = vsel %vm526_vm1, %v1255_v52, 0.0  ;;  %v1256_v43 = vmul.f32 %v3465_v32, %v2760_v54 }
 0x301   :  { %v1283_v50 = vadd.f32 %v1282_v5, %v1281_v0  ;;  %v1288_v14 = vsel %vm526_vm1, %v1258_v47, 0.0 }
 0x302   :  { %v1284_v39 = vsel %vm526_vm1, %v1256_v43, 0.0 }
 0x303   :  { %v1285_v44 = vadd.f32 %v1284_v39, %v1283_v50 }
 0x305   :  { %v1287_v37 = vadd.f32 %v1286_v1, %v1285_v44 }
 0x307   :  { %v1289_v25 = vadd.f32 %v1288_v14, %v1287_v37 }
 0x309   :  { %v1290_v18 = vrot.slane %v1289_v25, 4 }
 0x30b   :  { %v1291_v53 = vadd.f32 %v1290_v18, %v1289_v25 }
 0x30d   :  { %v1292_v63 = vrot.slane %v1291_v53, 2 }
 0x30f   :  { %v1293_v21 = vadd.f32 %v1292_v63, %v1291_v53  ;;  %v2409_v53 = vld [vmem:[%s3924_s9] sm:$0xff]   ;;  %v2410_v63 = vld [vmem:[%s3924_s9 + $0x8] sm:$0xff]  }
 0x310   :  { %2183 = vmatprep.subr.bf16.mxu1 %v2409_v53 }
 0x311   :  { %v1294_v30 = vrot.slane %v1293_v21, 1  ;;  %2184 = vmatpush3.bf16.msra.mxu1 %v2409_v53 }
 0x312   :  { %2185 = vmatprep.subr.bf16.mxu1 %v2410_v63 }
 0x313   :  { %v1295_v52 = vadd.f32 %v1294_v30, %v1293_v21 }
 0x315   :  { %v3478_v0 = vmul.f32 %v1295_v52, %v2792_v36  ;;  %2186 = vmatpush3.bf16.msra.mxu1 %v2410_v63 }
 0x317   :  { %v1297_v5 = vsub.f32 %v3385_v27, %v3478_v0  ;;  %v1298_v43 = vsub.f32 %v3393_v28, %v3478_v0  ;;  %v1299_v38 = vsub.f32 %v3382_v16, %v3478_v0  ;;  %v1300_v50 = vsub.f32 %v3390_v3, %v3478_v0 }
 0x318   :  { %v1301_v44 = vsub.f32 %v3408_v40, %v3478_v0  ;;  %v1302_v37 = vsub.f32 %v3417_v22, %v3478_v0  ;;  %v1303_v21 = vsub.f32 %v3405_v34, %v3478_v0 }
 0x319   :  { %v1313_v47 = vmul.f32 %v1297_v5, %v1297_v5  ;;  %v1314_v39 = vmul.f32 %v1298_v43, %v1298_v43  ;;  %v1315_v1 = vmul.f32 %v1299_v38, %v1299_v38  ;;  %v1316_v14 = vmul.f32 %v1300_v50, %v1300_v50 }
 0x31a   :  { %v1317_v30 = vmul.f32 %v1301_v44, %v1301_v44  ;;  %v1304_v5 = vsub.f32 %v3414_v9, %v3478_v0  ;;  %v1318_v43 = vmul.f32 %v1302_v37, %v1302_v37  ;;  %v1319_v7 = vmul.f32 %v1303_v21, %v1303_v21 }
 0x31b   :  { %v1329_v25 = vmul.f32 %v1313_v47, %v2644_v60  ;;  %v1330_v18 = vmul.f32 %v1314_v39, %v2631_v55  ;;  %v1331_v52 = vmul.f32 %v1315_v1, %v2633_v56  ;;  %v1332_v38 = vmul.f32 %v1316_v14, %v2635_v57  ;;  %v2411_v39 = vld [vmem:[%s3924_s9 + $0x10] sm:$0xff]  }
 0x31c   :  { %v1305_v1 = vsub.f32 %v3432_v10, %v3478_v0  ;;  %v1333_v61 = vmul.f32 %v1317_v30, %v2637_v58  ;;  %v1306_v14 = vsub.f32 %v3441_v24, %v3478_v0  ;;  %2187 = vmatprep.subr.bf16.mxu1 %v2411_v39  ;;  %v1307_v30 = vsub.f32 %v3429_v48, %v3478_v0 }
 0x31d   :  { %v1345_v50 = vsel %vm526_vm1, %v1329_v25, 0.0  ;;  %v1346_v47 = vsel %vm526_vm1, %v1330_v18, 0.0  ;;  %v1348_v37 = vsel %vm526_vm1, %v1331_v52, 0.0  ;;  %v1320_v25 = vmul.f32 %v1304_v5, %v1304_v5  ;;  %2188 = vmatpush3.bf16.msra.mxu1 %v2411_v39 }
 0x31e   :  { %v1347_v44 = vadd.f32 %v1346_v47, %v1345_v50  ;;  %v1334_v18 = vmul.f32 %v1318_v43, %v2651_v62  ;;  %v1350_v45 = vsel %vm526_vm1, %v1332_v38, 0.0  ;;  %v2412_v50 = vld [vmem:[%s3924_s9 + $0x18] sm:$0xff]   ;;  %v1321_v52 = vmul.f32 %v1305_v1, %v1305_v1 }
 0x31f   :  { %v1335_v63 = vmul.f32 %v1319_v7, %v2671_v6  ;;  %v1352_v47 = vsel %vm526_vm1, %v1333_v61, 0.0  ;;  %v1308_v5 = vsub.f32 %v3438_v31, %v3478_v0  ;;  %v1322_v43 = vmul.f32 %v1306_v14, %v1306_v14  ;;  %2189 = vmatprep.subr.bf16.mxu1 %v2412_v50 }
 0x320   :  { %v1349_v53 = vadd.f32 %v1348_v37, %v1347_v44  ;;  %v1336_v38 = vmul.f32 %v1320_v25, %v2681_v12  ;;  %v1354_v37 = vsel %vm526_vm1, %v1334_v18, 0.0  ;;  %v1323_v1 = vmul.f32 %v1307_v30, %v1307_v30 }
 0x321   :  { %v1337_v7 = vmul.f32 %v1321_v52, %v2699_v20  ;;  %v1356_v61 = vsel %vm526_vm1, %v1335_v63, 0.0  ;;  %2190 = vmatpush3.bf16.msra.mxu1 %v2412_v50  ;;  %v1310_v39 = vsub.f32 %v3465_v32, %v3478_v0  ;;  %v1324_v14 = vmul.f32 %v1308_v5, %v1308_v5 }
 0x322   :  { %v1351_v21 = vadd.f32 %v1350_v45, %v1349_v53  ;;  %v1309_v53 = vsub.f32 %v3456_v59, %v3478_v0  ;;  %v1338_v25 = vmul.f32 %v1322_v43, %v2709_v26  ;;  %v1358_v18 = vsel %vm526_vm1, %v1336_v38, 0.0 }
 0x323   :  { %v1339_v30 = vmul.f32 %v1323_v1, %v2727_v35  ;;  %v1360_v52 = vsel %vm526_vm1, %v1337_v7, 0.0  ;;  %v1312_v50 = vsub.f32 %v3462_v19, %v3478_v0  ;;  %v1340_v5 = vmul.f32 %v1324_v14, %v2737_v41 }
 0x324   :  { %v1353_v44 = vadd.f32 %v1352_v47, %v1351_v21  ;;  %v1362_v43 = vsel %vm526_vm1, %v1338_v25, 0.0 }
 0x325   :  { %v1328_v29 = vmul.f32 %v1312_v50, %v1312_v50  ;;  %v1366_v7 = vsel %vm526_vm1, %v1340_v5, 0.0 }
 0x326   :  { %v1355_v45 = vadd.f32 %v1354_v37, %v1353_v44  ;;  %v1311_v44 = vsub.f32 %v3453_v23, %v3478_v0  ;;  %v1325_v37 = vmul.f32 %v1309_v53, %v1309_v53 }
 0x327   :  { %v1344_v25 = vmul.f32 %v1328_v29, %v2780_v13  ;;  %v1241_v29 = vld [vmem:[%s3925_s7] sm:$0x1] }
 0x328   :  { %v1357_v21 = vadd.f32 %v1356_v61, %v1355_v45  ;;  %v1326_v45 = vmul.f32 %v1310_v39, %v1310_v39  ;;  %v1327_v38 = vmul.f32 %v1311_v44, %v1311_v44 }
 0x329   :  { %v1374_v50 = vsel %vm526_vm1, %v1344_v25, 0.0 }
 0x32a   :  { %v1359_v47 = vadd.f32 %v1358_v18, %v1357_v21  ;;  %v1341_v21 = vmul.f32 %v1325_v37, %v2750_v49  ;;  %v1364_v18 = vsel %vm526_vm1, %v1339_v30, 0.0  ;;  %v1342_v1 = vmul.f32 %v1326_v45, %v2760_v54 }
 0x32c   :  { %v1361_v63 = vadd.f32 %v1360_v52, %v1359_v47  ;;  %v1343_v52 = vmul.f32 %v1327_v38, %v2770_v4  ;;  %v1368_v39 = vsel %vm526_vm1, %v1341_v21, 0.0  ;;  %v1370_v44 = vsel %vm526_vm1, %v1342_v1, 0.0 }
 0x32e   :  { %v1363_v61 = vadd.f32 %v1362_v43, %v1361_v63  ;;  %v1372_v37 = vsel %vm526_vm1, %v1343_v52, 0.0  ;;  %v1242_v52 = vld [vmem:[%s3926_s8] sm:$0x1] }
 0x330   :  { %v1365_v53 = vadd.f32 %v1364_v18, %v1363_v61 }
 0x332   :  { %v1367_v47 = vadd.f32 %v1366_v7, %v1365_v53 }
 0x334   :  { %v1369_v14 = vadd.f32 %v1368_v39, %v1367_v47 }
 0x336   :  { %v1371_v63 = vadd.f32 %v1370_v44, %v1369_v14 }
 0x338   :  { %v1373_v30 = vadd.f32 %v1372_v37, %v1371_v63 }
 0x33a   :  { %v1375_v43 = vadd.f32 %v1374_v50, %v1373_v30 }
 0x33c   :  { %v1376_v45 = vrot.slane %v1375_v43, 4 }
 0x33e   :  { %v1377_v61 = vadd.f32 %v1376_v45, %v1375_v43 }
 0x340   :  { %v1378_v5 = vrot.slane %v1377_v61, 2 }
 0x342   :  { %v1379_v18 = vadd.f32 %v1378_v5, %v1377_v61 }
 0x344   :  { %v1380_v53 = vrot.slane %v1379_v18, 1 }
 0x346   :  { %v1381_v38 = vadd.f32 %v1380_v53, %v1379_v18 }
 0x348   :  { %v1382_v21 = vmul.f32 %v1381_v38, %v2792_v36 }
 0x34a   :  { %v1383_v7 = vadd.f32 1e-05, %v1382_v21 }
 0x34c   :  { %2451 = vrsqrt.f32 %v1383_v7 }
 0x356   :  { %v2452_v1 = vpop.eup %2451 }
 0x357   :  { %v1385_v47 = vmul.f32 %v2452_v1, %v1241_v29 }
 0x359   :  { %v1386_v39 = vmul.f32 %v1385_v47, %v3478_v0  ;;  %v1392_v14 = vrot.slane %v1385_v47, %v2886_v11 }
 0x35b   :  { %v1387_v25 = vsub.f32 %v1242_v52, %v1386_v39  ;;  %v1407_v44 = vmul.f32 %v1392_v14, %v3465_v32  ;;  %v1396_v63 = vmul.f32 %v1392_v14, %v3382_v16  ;;  %v1397_v37 = vmul.f32 %v1392_v14, %v3390_v3 }
 0x35c   :  { %v1394_v30 = vmul.f32 %v1392_v14, %v3385_v27  ;;  %v1395_v50 = vmul.f32 %v1392_v14, %v3393_v28  ;;  %v1398_v43 = vmul.f32 %v1392_v14, %v3408_v40  ;;  %v1400_v45 = vmul.f32 %v1392_v14, %v3405_v34 }
 0x35d   :  { %v1414_v36 = vrot.slane %v1387_v25, %v2886_v11  ;;  %v1401_v11 = vmul.f32 %v1392_v14, %v3414_v9  ;;  %v1399_v40 = vmul.f32 %v1392_v14, %v3417_v22  ;;  %v1402_v29 = vmul.f32 %v1392_v14, %v3432_v10 }
 0x35e   :  { %v1404_v1 = vmul.f32 %v1392_v14, %v3429_v48  ;;  %v1405_v9 = vmul.f32 %v1392_v14, %v3438_v31 }
 0x35f   :  { %v1429_v0 = vadd.f32 %v1414_v36, %v1407_v44  ;;  %v1418_v61 = vadd.f32 %v1414_v36, %v1396_v63  ;;  %v1419_v5 = vadd.f32 %v1414_v36, %v1397_v37  ;;  %v1416_v18 = vadd.f32 %v1414_v36, %v1394_v30 }
 0x360   :  { %v1417_v53 = vadd.f32 %v1414_v36, %v1395_v50  ;;  %v1420_v32 = vadd.f32 %v1414_v36, %v1398_v43  ;;  %v1422_v16 = vadd.f32 %v1414_v36, %v1400_v45  ;;  %v1423_v7 = vadd.f32 %v1414_v36, %v1401_v11 }
 0x361   :  { %v1461_v38 = vmul.f32 0.70710677, %v1429_v0  ;;  %v1450_v21 = vmul.f32 0.70710677, %v1418_v61  ;;  %v1451_v3 = vmul.f32 0.70710677, %v1419_v5  ;;  %v1421_v52 = vadd.f32 %v1414_v36, %v1399_v40 }
 0x362   :  { %v1448_v27 = vmul.f32 0.70710677, %v1416_v18  ;;  %v1449_v28 = vmul.f32 0.70710677, %v1417_v53  ;;  %v1452_v34 = vmul.f32 0.70710677, %v1420_v32  ;;  %v1424_v25 = vadd.f32 %v1414_v36, %v1402_v29 }
 0x363   :  { %2453 = verf.f32 %v1461_v38  ;;  %v1454_v47 = vmul.f32 0.70710677, %v1422_v16  ;;  %v1455_v39 = vmul.f32 0.70710677, %v1423_v7  ;;  %v1426_v44 = vadd.f32 %v1414_v36, %v1404_v1 }
 0x364   :  { %2455 = verf.f32 %v1450_v21  ;;  %v1453_v63 = vmul.f32 0.70710677, %v1421_v52  ;;  %v1403_v37 = vmul.f32 %v1392_v14, %v3441_v24  ;;  %v1427_v22 = vadd.f32 %v1414_v36, %v1405_v9 }
 0x365   :  { %2457 = verf.f32 %v1451_v3  ;;  %v1406_v30 = vmul.f32 %v1392_v14, %v3456_v59  ;;  %v3580_v10 = vmul.f32 0.5, %v1429_v0  ;;  %v1456_v48 = vmul.f32 0.70710677, %v1424_v25 }
 0x366   :  { %2459 = verf.f32 %v1448_v27  ;;  %v1425_v50 = vadd.f32 %v1414_v36, %v1403_v37  ;;  %v1434_v43 = vmul.f32 0.5, %v1418_v61  ;;  %v1458_v31 = vmul.f32 0.70710677, %v1426_v44 }
 0x367   :  { %2461 = verf.f32 %v1449_v28  ;;  %v1428_v45 = vadd.f32 %v1414_v36, %v1406_v30  ;;  %v1435_v11 = vmul.f32 0.5, %v1419_v5  ;;  %v1408_v38 = vmul.f32 %v1392_v14, %v3453_v23 }
 0x368   :  { %2463 = verf.f32 %v1452_v34  ;;  %v1409_v21 = vmul.f32 %v1392_v14, %v3462_v19  ;;  %v1432_v24 = vmul.f32 0.5, %v1416_v18  ;;  %v1433_v3 = vmul.f32 0.5, %v1417_v53  ;;  %v2413_v18 = vld [vmem:[%s3924_s9 + $0x20] sm:$0xff]  }
 0x369   :  { %2465 = verf.f32 %v1454_v47  ;;  %v1436_v27 = vmul.f32 0.5, %v1420_v32  ;;  %v1459_v28 = vmul.f32 0.70710677, %v1427_v22  ;;  %v1457_v0 = vmul.f32 0.70710677, %v1425_v50  ;;  %2191 = vmatprep.subr.bf16.mxu1 %v2413_v18 }
 0x36a   :  { %2467 = verf.f32 %v1455_v39  ;;  %v3584_v40 = vadd.f32 %v1414_v36, %v1408_v38  ;;  %v3586_v34 = vadd.f32 %v1414_v36, %v1409_v21  ;;  %v1438_v29 = vmul.f32 0.5, %v1422_v16  ;;  %2192 = vmatpush3.bf16.msra.mxu1 %v2413_v18 }
 0x36b   :  { %2469 = verf.f32 %v1453_v63  ;;  %v1439_v1 = vmul.f32 0.5, %v1423_v7  ;;  %v1460_v5 = vmul.f32 0.70710677, %v1428_v45  ;;  %v1437_v9 = vmul.f32 0.5, %v1421_v52 }
 0x36c   :  { %2471 = verf.f32 %v1456_v48  ;;  %v3588_v19 = vmul.f32 0.5, %v1424_v25  ;;  %v3590_v14 = vmul.f32 0.5, %v1426_v44  ;;  %v1462_v36 = vmul.f32 0.70710677, %v3584_v40 }
 0x36d   :  { %v2454_v59 = vpop.eup %2453  ;;  %2473 = verf.f32 %v1458_v31  ;;  %v1463_v16 = vmul.f32 0.70710677, %v3586_v34  ;;  %v3597_v37 = vmul.f32 0.5, %v1427_v22  ;;  %v3599_v30 = vmul.f32 0.5, %v1425_v50 }
 0x36e   :  { %v2456_v61 = vpop.eup %2455  ;;  %2475 = verf.f32 %v1459_v28 }
 0x36f   :  { %v2458_v47 = vpop.eup %2457  ;;  %v1482_v23 = vadd.f32 1.0, %v2456_v61  ;;  %2477 = verf.f32 %v1457_v0 }
 0x370   :  { %v2460_v53 = vpop.eup %2459  ;;  %v1483_v32 = vadd.f32 1.0, %v2458_v47  ;;  %2479 = verf.f32 %v1460_v5  ;;  %v3610_v47 = vmul.f32 0.5, %v1428_v45 }
 0x371   :  { %v2462_v7 = vpop.eup %2461  ;;  %v1498_v39 = vmul.f32 %v1482_v23, %v1434_v43  ;;  %v1480_v63 = vadd.f32 1.0, %v2460_v53  ;;  %2481 = verf.f32 %v1462_v36 }
 0x372   :  { %v2464_v52 = vpop.eup %2463  ;;  %v1499_v25 = vmul.f32 %v1483_v32, %v1435_v11  ;;  %v1481_v44 = vadd.f32 1.0, %v2462_v7  ;;  %2483 = verf.f32 %v1463_v16 }
 0x373   :  { %v2466_v48 = vpop.eup %2465  ;;  %v3602_v31 = vmul.f32 %v1498_v39, %v2633_v56  ;;  %v1496_v38 = vmul.f32 %v1480_v63, %v1432_v24  ;;  %v1484_v21 = vadd.f32 1.0, %v2464_v52  ;;  %v1493_v39 = vadd.f32 1.0, %v2454_v59 }
 0x374   :  { %v2468_v43 = vpop.eup %2467  ;;  %v3605_v22 = vmul.f32 %v1499_v25, %v2635_v57  ;;  %v1497_v28 = vmul.f32 %v1481_v44, %v1433_v3  ;;  %v1486_v0 = vadd.f32 1.0, %v2466_v48  ;;  %v2414_v3 = vld [vmem:[%s3924_s9 + $0x28] sm:$0xff]  }
 0x375   :  { %v2470_v11 = vpop.eup %2469  ;;  %v3608_v50 = vmul.f32 %v1496_v38, %v2644_v60  ;;  %v1500_v61 = vmul.f32 %v1484_v21, %v1436_v27  ;;  %v1487_v5 = vadd.f32 1.0, %v2468_v43  ;;  %v1591_v18 = vrot.slane %v3602_v31, 1  ;;  %2193 = vmatprep.subr.bf16.mxu1 %v2414_v3 }
 0x376   :  { %v2328_v24 = vpack.i.bf16 %v3605_v22, %v3602_v31  ;;  %v3615_v23 = vmul.f32 %v1497_v28, %v2631_v55  ;;  %v1502_v53 = vmul.f32 %v1486_v0, %v1438_v29  ;;  %v2472_v32 = vpop.eup %2471  ;;  %v1592_v45 = vrot.slane %v3605_v22, 1  ;;  %2194 = vmatpush3.bf16.msra.mxu1 %v2414_v3 }
 0x377   :  { %v3622_v36 = vmul.f32 %v1500_v61, %v2637_v58  ;;  %v1503_v27 = vmul.f32 %v1487_v5, %v1439_v1  ;;  %v1485_v16 = vadd.f32 1.0, %v2470_v11  ;;  %v2474_v7 = vpop.eup %2473  ;;  %v3945_v29 = vrot.slane %v3608_v50, 1 }
 0x378   :  { %2329 = vrot.lane.b32.xlu0 %v2328_v24, %s2490_s18  ;;  %v2323_v63 = vpack.i.bf16 %v3615_v23, %v3608_v50  ;;  %v1590_v52 = vrot.slane %v3615_v23, 1  ;;  %v3632_v44 = vmul.f32 %v1502_v53, %v2671_v6  ;;  %v1446_v1 = vmul.f32 0.5, %v3584_v40  ;;  %v2476_v59 = vpop.eup %2475  ;;  %v3978_v53 = vld [vmem:[#allocation3_spill] sm:$0xff] }
 0x379   :  { %v1593_v25 = vrot.slane %v3622_v36, 1  ;;  %v1501_v48 = vmul.f32 %v1485_v16, %v1437_v9  ;;  %v3639_v21 = vmul.f32 %v1503_v27, %v2681_v12  ;;  %v1488_v43 = vadd.f32 1.0, %v2472_v32  ;;  %v2478_v0 = vpop.eup %2477  ;;  %v3977_v9 = vld [vmem:[#allocation4_spill] sm:$0xff] }
 0x37a   :  { %2324 = vrot.lane.b32.xlu1 %v2323_v63, %s2490_s18  ;;  %v1618_v38 = vsel %vm875_vm8, %v1590_v52, %v1591_v18  ;;  %v1447_v28 = vmul.f32 0.5, %v3586_v34  ;;  %v1490_v5 = vadd.f32 1.0, %v2474_v7  ;;  %v2480_v24 = vpop.eup %2479  ;;  %v1619_v32 = vsel %vm875_vm8, %v3945_v29, %v1590_v52 }
 0x37b   :  { %v1616_v11 = vsel %vm875_vm8, %v1592_v45, %v1593_v25  ;;  %v1622_v61 = vmul.f32 %v3977_v9, %v1618_v38  ;;  %v3646_v40 = vmul.f32 %v1501_v48, %v2651_v62  ;;  %v1504_v34 = vmul.f32 %v1488_v43, %v3588_v19  ;;  %v2482_v16 = vpop.eup %2481 }
 0x37c   :  { %v1624_v3 = vmul.f32 %v3978_v53, %v1616_v11  ;;  %v1595_v27 = vrot.slane %v3632_v44, 1  ;;  %v1617_v63 = vsel %vm875_vm8, %v1591_v18, %v1592_v45  ;;  %v1509_v7 = vmul.f32 %v1493_v39, %v3580_v10  ;;  %v2484_v9 = vpop.eup %2483 }
 0x37d   :  { %v2333_v38 = vpack.i.bf16 %v1622_v61, %v1619_v32  ;;  %v1594_v48 = vrot.slane %v3646_v40, 1  ;;  %v3660_v53 = vmul.f32 %v1504_v34, %v2699_v20  ;;  %v1596_v52 = vrot.slane %v3639_v21, 1 }
 0x37e   :  { %v2338_v11 = vpack.i.bf16 %v1624_v3, %v1617_v63  ;;  %v1491_v29 = vadd.f32 1.0, %v2476_v59  ;;  %v2343_v19 = vpack.i.bf16 %v3646_v40, %v3622_v36  ;;  %v1506_v45 = vmul.f32 %v1490_v5, %v3590_v14 }
 0x37f   :  { %2334 = vrot.lane.b32.xlu1 %v2333_v38, %s2491_s5  ;;  %v1614_v18 = vsel %vm875_vm8, %v1594_v48, %v1595_v27  ;;  %v1489_v43 = vadd.f32 1.0, %v2478_v0  ;;  %v1597_v10 = vrot.slane %v3660_v53, 1  ;;  %v1492_v59 = vadd.f32 1.0, %v2480_v24 }
 0x380   :  { %2339 = vrot.lane.b32.xlu0 %v2338_v11, %s2491_s5  ;;  %v1626_v39 = vmul.f32 %v2907_v42, %v1614_v18  ;;  %v1507_v61 = vmul.f32 %v1491_v29, %v3597_v37  ;;  %v3674_v3 = vmul.f32 %v1506_v45, %v2727_v35  ;;  %v1494_v34 = vadd.f32 1.0, %v2482_v16 }
 0x381   :  { %v1505_v32 = vmul.f32 %v1489_v43, %v3599_v30  ;;  %v1495_v63 = vadd.f32 1.0, %v2484_v9  ;;  %v2348_v14 = vpack.i.bf16 %v3639_v21, %v3632_v44  ;;  %v1612_v0 = vsel %vm875_vm8, %v1596_v52, %v1597_v10 }
 0x382   :  { %v3682_v5 = vmul.f32 %v1507_v61, %v2737_v41  ;;  %v1508_v42 = vmul.f32 %v1492_v59, %v3610_v47  ;;  %v1628_v37 = vmul.f32 %v2902_v33, %v1612_v0  ;;  %v1599_v30 = vrot.slane %v3674_v3, 1 }
 0x383   :  { %2344 = vrot.lane.b32.xlu1 %v2343_v19, %s2490_s18  ;;  %v3688_v29 = vmul.f32 %v1505_v32, %v2709_v26  ;;  %v1510_v24 = vmul.f32 %v1494_v34, %v1446_v1  ;;  %v1615_v16 = vsel %vm875_vm8, %v1593_v25, %v1594_v48  ;;  %v1511_v9 = vmul.f32 %v1495_v63, %v1447_v28 }
 0x384   :  { %2349 = vrot.lane.b32.xlu0 %v2348_v14, %s2490_s18  ;;  %v3695_v38 = vmul.f32 %v1508_v42, %v2750_v49  ;;  %v1600_v47 = vrot.slane %v3682_v5, 1  ;;  %v1613_v33 = vsel %vm875_vm8, %v1595_v27, %v1596_v52  ;;  %v2353_v11 = vpack.i.bf16 %v1626_v39, %v1615_v16 }
 0x385   :  { %v1598_v19 = vrot.slane %v3688_v29, 1  ;;  %v3702_v18 = vmul.f32 %v1509_v7, %v2760_v54  ;;  %v2358_v1 = vpack.i.bf16 %v1628_v37, %v1613_v33  ;;  %v1539_v25 = vmul.f32 %v1510_v24, %v2770_v4 }
 0x386   :  { %v1601_v45 = vrot.slane %v3695_v38, 1  ;;  %v1540_v48 = vmul.f32 %v1511_v9, %v2780_v13  ;;  %v1542_v43 = vrot.slane %v3615_v23, 7  ;;  %v2368_v27 = vpack.i.bf16 %v3682_v5, %v3674_v3 }
 0x387   :  { %2354 = vrot.lane.b32.xlu1 %v2353_v11, %s2491_s5  ;;  %v1610_v28 = vsel %vm875_vm8, %v1598_v19, %v1599_v30  ;;  %v2363_v7 = vpack.i.bf16 %v3688_v29, %v3660_v53  ;;  %v1603_v59 = vrot.slane %v1539_v25, 1  ;;  %v1602_v32 = vrot.slane %v3702_v18, 1 }
 0x388   :  { %2359 = vrot.lane.b32.xlu0 %v2358_v1, %s2491_s5  ;;  %v1608_v52 = vsel %vm875_vm8, %v1600_v47, %v1601_v45  ;;  %v1630_v39 = vmul.f32 %v2956_v15, %v1610_v28  ;;  %v1556_v61 = vrot.slane %v1540_v48, 7  ;;  %v1604_v34 = vrot.slane %v1540_v48, 1 }
 0x389   :  { %v1632_v23 = vmul.f32 %v2950_v17, %v1608_v52  ;;  %v1544_v63 = vrot.slane %v3605_v22, 7  ;;  %v1543_v14 = vrot.slane %v3602_v31, 7  ;;  %v1541_v0 = vrot.slane %v3608_v50, 7 }
 0x38a   :  { %v1546_v42 = vrot.slane %v3646_v40, 7  ;;  %v1550_v37 = vrot.slane %v3688_v29, 7  ;;  %v1611_v17 = vsel %vm875_vm8, %v1597_v10, %v1598_v19  ;;  %v1609_v15 = vsel %vm875_vm8, %v1599_v30, %v1600_v47 }
 0x38b   :  { %2364 = vrot.lane.b32.xlu1 %v2363_v7, %s2490_s18  ;;  %v2373_v24 = vpack.i.bf16 %v1630_v39, %v1611_v17  ;;  %v1606_v31 = vsel %vm875_vm8, %v1602_v32, %v1603_v59  ;;  %v1569_v22 = vsel %vm826_vm11, %v1543_v14, %v1544_v63  ;;  %v1570_v40 = vsel %vm826_vm11, %v1542_v43, %v1543_v14 }
 0x38c   :  { %2369 = vrot.lane.b32.xlu0 %v2368_v27, %s2490_s18  ;;  %v1571_v29 = vsel %vm826_vm11, %v1541_v0, %v1542_v43  ;;  %v1572_v10 = vsel %vm826_vm11, %v1556_v61, %v1541_v0  ;;  %v1547_v16 = vrot.slane %v3632_v44, 7  ;;  %v2378_v9 = vpack.i.bf16 %v1632_v23, %v1609_v15  ;;  %v3981_v23 = vld [vmem:[#allocation5_spill] sm:$0xff] }
 0x38d   :  { %v1554_v30 = vrot.slane %v3702_v18, 7  ;;  %v2383_v47 = vpack.i.bf16 %v3702_v18, %v3695_v38  ;;  %v3979_v33 = vrot.slane %v3608_v50, 1  ;;  %v1548_v19 = vrot.slane %v3639_v21, 7  ;;  %v3980_v18 = vld [vmem:[#allocation6_spill] sm:$0xff] }
 0x38e   :  { %v3754_v1 = vsel %vm826_vm11, %v1546_v42, %v1547_v16  ;;  %v1545_v44 = vrot.slane %v3622_v36, 7  ;;  %v1551_v43 = vrot.slane %v3674_v3, 7  ;;  %v1634_v28 = vmul.f32 %v3980_v18, %v1606_v31 }
 0x38f   :  { %v1620_v11 = vsel %vm875_vm8, %v1604_v34, %v3979_v33  ;;  %2374 = vrot.lane.b32.xlu1 %v2373_v24, %s2491_s5  ;;  %v1552_v50 = vrot.slane %v3682_v5, 7  ;;  %v1549_v27 = vrot.slane %v3660_v53, 7  ;;  %v1555_v7 = vrot.slane %v1539_v25, 7 }
 0x390   :  { %2379 = vrot.lane.b32.xlu0 %v2378_v9, %s2491_s5  ;;  %v3764_v21 = vsel %vm826_vm11, %v1547_v16, %v1548_v19  ;;  %v1567_v52 = vsel %vm826_vm11, %v1545_v44, %v1546_v42  ;;  %v1568_v36 = vsel %vm826_vm11, %v1544_v63, %v1545_v44  ;;  %v3772_v3 = vsel %vm826_vm11, %v1550_v37, %v1551_v43 }
 0x391   :  { %v2388_v39 = vpack.i.bf16 %v1540_v48, %v1539_v25  ;;  %v1636_v5 = vmul.f32 %v3981_v23, %v1620_v11  ;;  %v3777_v53 = vsel %vm826_vm11, %v1551_v43, %v1552_v50  ;;  %v3781_v14 = vsel %vm826_vm11, %v1549_v27, %v1550_v37 }
 0x392   :  { %v3786_v63 = vsel %vm826_vm11, %v1548_v19, %v1549_v27  ;;  %v3790_v0 = vsel %vm826_vm11, %v1555_v7, %v1556_v61  ;;  %v3794_v25 = vsel %vm826_vm11, %v1554_v30, %v1555_v7  ;;  %v1553_v48 = vrot.slane %v3695_v38, 7 }
 0x393   :  { %2384 = vrot.lane.b32.xlu1 %v2383_v47, %s2490_s18  ;;  %v1607_v42 = vsel %vm875_vm8, %v1601_v45, %v1602_v32  ;;  %v1605_v37 = vsel %vm875_vm8, %v1603_v59, %v1604_v34  ;;  %v3982_v34 = vld [vmem:[#allocation7_spill] sm:$0xff] }
 0x394   :  { %2389 = vrot.lane.b32.xlu0 %v2388_v39, %s2490_s18  ;;  %v2393_v17 = vpack.i.bf16 %v1634_v28, %v1607_v42  ;;  %v3804_v15 = vsel %vm826_vm11, %v1553_v48, %v1554_v30  ;;  %v3808_v61 = vsel %vm826_vm11, %v1552_v50, %v1553_v48  ;;  %v2398_v24 = vpack.i.bf16 %v1636_v5, %v1605_v37  ;;  %v3983_v30 = vld [vmem:[#allocation8_spill] sm:$0xff] }
 0x395   :  { %v1573_v9 = vmul.f32 %v3982_v34, %v1572_v10  ;;  %v1575_v33 = vmul.f32 %v3983_v30, %v1570_v40 }
 0x397   :  { %2394 = vrot.lane.b32.xlu1 %v2393_v17, %s2491_s5 }
 0x398   :  { %2399 = vrot.lane.b32.xlu0 %v2398_v24, %s2491_s5 }
 0x3ea   :  { %v2330_v38 = vpop.permute.xlu0 %2329 }
 0x3eb   :  { %v2332_v16 = vunpack.i.h.bf16 %v2330_v38  ;;  %v2331_v59 = vunpack.i.l.bf16 %v2330_v38 }
 0x3ec   :  { %v2325_v31 = vpop.permute.xlu1 %2324 }
 0x3ed   :  { %v2327_v45 = vunpack.i.h.bf16 %v2325_v31  ;;  %v2326_v32 = vunpack.i.l.bf16 %v2325_v31  ;;  %v1767_v50 = vsel %vm526_vm1, %v1575_v33, %v2331_v59  ;;  %v1768_v27 = vsel %vm526_vm1, %v1569_v22, %v2332_v16 }
 0x3ee   :  { %v1577_v22 = vmul.f32 %v3287_v8, %v1568_v36  ;;  %v1579_v31 = vmul.f32 %v3292_v2, %v3754_v1 }
 0x3ef   :  { %v1765_v44 = vsel %vm526_vm1, %v1573_v9, %v2326_v32  ;;  %v1766_v43 = vsel %vm526_vm1, %v1571_v29, %v2327_v45 }
 0x3f1   :  { %v2335_v47 = vpop.permute.xlu1 %2334 }
 0x3f2   :  { %v2340_v11 = vpop.permute.xlu0 %2339  ;;  %v2337_v46 = vunpack.i.h.bf16 %v2335_v47  ;;  %v2336_v19 = vunpack.i.l.bf16 %v2335_v47 }
 0x3f3   :  { %v2342_v18 = vunpack.i.h.bf16 %v2340_v11  ;;  %v2341_v28 = vunpack.i.l.bf16 %v2340_v11 }
 0x3f4   :  { %v1781_v7 = vsel %vm1052_vm15, %v1765_v44, %v2336_v19  ;;  %v1782_v10 = vsel %vm1052_vm15, %v1766_v43, %v2337_v46 }
 0x3f5   :  { %v1783_v39 = vsel %vm1052_vm15, %v1767_v50, %v2341_v28  ;;  %v1784_v40 = vsel %vm1052_vm15, %v1768_v27, %v2342_v18  ;;  %v1797_v23 = vpack.c.bf16 %v1782_v10, %v1781_v7  ;;  %v2345_v5 = vpop.permute.xlu1 %2344  ;;  %v1581_v28 = vmul.f32 %v3323_v51, %v3786_v63  ;;  %v3984_v27 = vld [vmem:[#allocation9_spill] sm:$0xff] }
 0x3f6   :  { %v1798_v48 = vpack.c.bf16 %v1784_v40, %v1783_v39  ;;  %v2350_v42 = vpop.permute.xlu0 %2349  ;;  %v2347_v37 = vunpack.i.h.bf16 %v2345_v5  ;;  %v2346_v29 = vunpack.i.l.bf16 %v2345_v5  ;;  %v1583_v7 = vmul.f32 %v3984_v27, %v3772_v3 }
 0x3f7   :  { %2195 = vmatprep.mubr.msk.bf16.mxu1 %vm1119_vm2, %v1797_v23  ;;  %v2352_v17 = vunpack.i.h.bf16 %v2350_v42  ;;  %v2351_v24 = vunpack.i.l.bf16 %v2350_v42 }
 0x3f8   :  { %2196 = vmatmul.mubr.msk.bf16.vlgmr.msra.gmra.mrb[16].mxu1 %vm1119_vm2, %v1798_v48  ;;  %v1770_v59 = vsel %vm526_vm1, %v1567_v52, %v2347_v37  ;;  %v1769_v34 = vsel %vm526_vm1, %v1577_v22, %v2346_v29 }
 0x3f9   :  { %v2355_v38 = vpop.permute.xlu1 %2354  ;;  %v1772_v30 = vsel %vm526_vm1, %v3764_v21, %v2352_v17  ;;  %v1771_v33 = vsel %vm526_vm1, %v1579_v31, %v2351_v24 }
 0x3fa   :  { %v2360_v45 = vpop.permute.xlu0 %2359  ;;  %v2357_v32 = vunpack.i.h.bf16 %v2355_v38  ;;  %v2356_v16 = vunpack.i.l.bf16 %v2355_v38 }
 0x3fb   :  { %v2362_v9 = vunpack.i.h.bf16 %v2360_v45  ;;  %v2361_v47 = vunpack.i.l.bf16 %v2360_v45 }
 0x3fc   :  { %v1785_v8 = vsel %vm1052_vm15, %v1769_v34, %v2356_v16  ;;  %v1786_v36 = vsel %vm1052_vm15, %v1770_v59, %v2357_v32  ;;  %v3985_v16 = vld [vmem:[#allocation10_spill] sm:$0xff] }
 0x3fd   :  { %v1787_v2 = vsel %vm1052_vm15, %v1771_v33, %v2361_v47  ;;  %v1788_v1 = vsel %vm1052_vm15, %v1772_v30, %v2362_v9  ;;  %v1799_v11 = vpack.c.bf16 %v1786_v36, %v1785_v8  ;;  %v2365_v46 = vpop.permute.xlu1 %2364  ;;  %v1585_v59 = vmul.f32 %v3985_v16, %v3808_v61  ;;  %v3986_v9 = vld [vmem:[#allocation11_spill] sm:$0xff] }
 0x3fe   :  { %v1800_v52 = vpack.c.bf16 %v1788_v1, %v1787_v2  ;;  %v2370_v19 = vpop.permute.xlu0 %2369  ;;  %v2367_v44 = vunpack.i.h.bf16 %v2365_v46  ;;  %v2366_v43 = vunpack.i.l.bf16 %v2365_v46  ;;  %v1587_v47 = vmul.f32 %v3986_v9, %v3794_v25 }
 0x3ff   :  { %2199 = vmatprep.mubr.msk.bf16.mxu1 %vm1119_vm2, %v1799_v11  ;;  %v2372_v18 = vunpack.i.h.bf16 %v2370_v19  ;;  %v2371_v21 = vunpack.i.l.bf16 %v2370_v19 }
 0x400   :  { %2200 = vmatmul.mubr.msk.bf16.gmra.mrb[20].mxu1 %vm1119_vm2, %v1800_v52  ;;  %v1774_v23 = vsel %vm526_vm1, %v3781_v14, %v2367_v44  ;;  %v1773_v5 = vsel %vm526_vm1, %v1581_v28, %v2366_v43 }
 0x401   :  { %v2375_v50 = vpop.permute.xlu1 %2374  ;;  %v1776_v37 = vsel %vm526_vm1, %v3777_v53, %v2372_v18  ;;  %v1775_v29 = vsel %vm526_vm1, %v1583_v7, %v2371_v21 }
 0x402   :  { %v2380_v10 = vpop.permute.xlu0 %2379  ;;  %v2377_v39 = vunpack.i.h.bf16 %v2375_v50  ;;  %v2376_v40 = vunpack.i.l.bf16 %v2375_v50 }
 0x403   :  { %v2382_v48 = vunpack.i.h.bf16 %v2380_v10  ;;  %v2381_v42 = vunpack.i.l.bf16 %v2380_v10 }
 0x404   :  { %v1789_v51 = vsel %vm1052_vm15, %v1773_v5, %v2376_v40  ;;  %v1790_v63 = vsel %vm1052_vm15, %v1774_v23, %v2377_v39 }
 0x405   :  { %v1791_v3 = vsel %vm1052_vm15, %v1775_v29, %v2381_v42  ;;  %v1792_v17 = vsel %vm1052_vm15, %v1776_v37, %v2382_v48  ;;  %v1801_v24 = vpack.c.bf16 %v1790_v63, %v1789_v51  ;;  %v2385_v22 = vpop.permute.xlu1 %2384 }
 0x406   :  { %v1802_v14 = vpack.c.bf16 %v1792_v17, %v1791_v3  ;;  %v2390_v38 = vpop.permute.xlu0 %2389  ;;  %v2387_v31 = vunpack.i.h.bf16 %v2385_v22  ;;  %v2386_v45 = vunpack.i.l.bf16 %v2385_v22 }
 0x407   :  { %2203 = vmatprep.mubr.msk.bf16.mxu1 %vm1119_vm2, %v1801_v24  ;;  %v2392_v32 = vunpack.i.h.bf16 %v2390_v38  ;;  %v2391_v53 = vunpack.i.l.bf16 %v2390_v38 }
 0x408   :  { %2204 = vmatmul.mubr.msk.bf16.gmra.mrb[24].mxu1 %vm1119_vm2, %v1802_v14  ;;  %v1778_v36 = vsel %vm526_vm1, %v3804_v15, %v2387_v31  ;;  %v1777_v2 = vsel %vm526_vm1, %v1585_v59, %v2386_v45  ;;  %v3987_v15 = vmov 0.0  }
 0x409   :  { %v2395_v34 = vpop.permute.xlu1 %2394  ;;  %v1780_v46 = vsel %vm526_vm1, %v3790_v0, %v2392_v32  ;;  %v1779_v52 = vsel %vm526_vm1, %v1587_v47, %v2391_v53  ;;  %2227 = vmatprep.mubr.msk.bf16.mxu0 %vm2492_vm7, %v3987_v15  ;;  %v2102_v0 = vld [vmem:[%s3927_s10] ss:$0 sm:$0xff] }
 0x40a   :  { %v2400_v30 = vpop.permute.xlu0 %2399  ;;  %v2397_v33 = vunpack.i.h.bf16 %v2395_v34  ;;  %v2396_v8 = vunpack.i.l.bf16 %v2395_v34 }
 0x40b   :  { %v2402_v1 = vunpack.i.h.bf16 %v2400_v30  ;;  %v2401_v11 = vunpack.i.l.bf16 %v2400_v30 }
 0x40c   :  { %v1793_v61 = vsel %vm1052_vm15, %v1777_v2, %v2396_v8  ;;  %v1794_v19 = vsel %vm1052_vm15, %v1778_v36, %v2397_v33 }
 0x40d   :  { %v1796_v25 = vsel %vm1052_vm15, %v1780_v46, %v2402_v1  ;;  %v1795_v44 = vsel %vm1052_vm15, %v1779_v52, %v2401_v11  ;;  %v1803_v43 = vpack.c.bf16 %v1794_v19, %v1793_v61 }
 0x40e   :  { %v1804_v18 = vpack.c.bf16 %v1796_v25, %v1795_v44 }
 0x40f   :  { %2207 = vmatprep.mubr.msk.bf16.mxu1 %vm1119_vm2, %v1803_v43 }
 0x410   :  { %2208 = vmatmul.mubr.msk.bf16.gmra.mrb[28].mxu1 %vm1119_vm2, %v1804_v18 }
 0x4cb   :  { %v2197_v21 = vpop.f32.mrb[16].mxu1 }
 0x4cc   :  { %v1914_v28 = vadd.f32 %v2197_v21, %v2102_v0  ;;  %v1905_v50 = vpop.f32.mrb[17].mxu1 }
 0x4cd   :  { %v1906_v27 = vadd.f32 %v2102_v0, %v1905_v50  ;;  %v2198_v7 = vpop.f32.mrb[18].mxu1 }
 0x4ce   :  { %v1917_v10 = vadd.f32 %v2198_v7, %v2102_v0  ;;  %v1908_v39 = vpop.f32.mrb[19].mxu1  ;;  %v1970_v23 = vmul.f32 %v1914_v28, %v2633_v56 }
 0x4cf   :  { %v1909_v40 = vadd.f32 %v2102_v0, %v1908_v39  ;;  %v1968_v48 = vmul.f32 %v1906_v27, %v2644_v60 }
 0x4d0   :  { %v1971_v5 = vmul.f32 %v1917_v10, %v2635_v57 }
 0x4d1   :  { %v1969_v42 = vmul.f32 %v1909_v40, %v2631_v55 }
 0x4d2   :  { %v1985_v37 = vpack.c.bf16 %v1971_v5, %v1970_v23 }
 0x4d3   :  { %v2201_v29 = vpop.f32.mrb[20].mxu1  ;;  %v1984_v51 = vpack.c.bf16 %v1969_v42, %v1968_v48 }
 0x4d4   :  { %v1930_v63 = vadd.f32 %v2201_v29, %v2102_v0  ;;  %v1921_v3 = vpop.f32.mrb[21].mxu1  ;;  %v2002_v47 = vsel %vm526_vm1, %v1985_v37, 0 }
 0x4d5   :  { %v1922_v17 = vadd.f32 %v2102_v0, %v1921_v3  ;;  %v2202_v24 = vpop.f32.mrb[22].mxu1  ;;  %v1999_v22 = vsel %vm526_vm1, %v1984_v51, 0 }
 0x4d6   :  { %v1933_v14 = vadd.f32 %v2202_v24, %v2102_v0  ;;  %v1924_v38 = vpop.f32.mrb[23].mxu1  ;;  %2212 = vmatpush3.bf16.xpose.msra.mxu0 %v1999_v22  ;;  %v1974_v56 = vmul.f32 %v1930_v63, %v2671_v6 }
 0x4d7   :  { %v1925_v31 = vadd.f32 %v2102_v0, %v1924_v38  ;;  %2213 = vmatprep.subr.bf16.mxu0 %v3987_v15  ;;  %v1972_v55 = vmul.f32 %v1922_v17, %v2637_v58 }
 0x4d8   :  { %v1975_v57 = vmul.f32 %v1933_v14, %v2681_v12 }
 0x4d9   :  { %v1973_v60 = vmul.f32 %v1925_v31, %v2651_v62 }
 0x4da   :  { %v1987_v45 = vpack.c.bf16 %v1975_v57, %v1974_v56 }
 0x4db   :  { %v2205_v32 = vpop.f32.mrb[24].mxu1  ;;  %v1986_v53 = vpack.c.bf16 %v1973_v60, %v1972_v55 }
 0x4dc   :  { %v1946_v16 = vadd.f32 %v2205_v32, %v2102_v0  ;;  %v1937_v59 = vpop.f32.mrb[25].mxu1  ;;  %v2008_v28 = vsel %vm526_vm1, %v1987_v45, 0 }
 0x4dd   :  { %v1938_v34 = vadd.f32 %v2102_v0, %v1937_v59  ;;  %v2206_v9 = vpop.f32.mrb[26].mxu1  ;;  %v2005_v19 = vsel %vm526_vm1, %v1986_v53, 0 }
 0x4de   :  { %v1949_v30 = vadd.f32 %v2206_v9, %v2102_v0  ;;  %v1940_v33 = vpop.f32.mrb[27].mxu1  ;;  %2214 = vmatpush3.bf16.xpose.msra.mxu0 %v2002_v47  ;;  %v1978_v6 = vmul.f32 %v1946_v16, %v2727_v35 }
 0x4df   :  { %v1941_v8 = vadd.f32 %v2102_v0, %v1940_v33  ;;  %2215 = vmatprep.subr.bf16.mxu0 %v3987_v15  ;;  %v1976_v62 = vmul.f32 %v1938_v34, %v2699_v20 }
 0x4e0   :  { %v1979_v58 = vmul.f32 %v1949_v30, %v2737_v41 }
 0x4e1   :  { %v1977_v12 = vmul.f32 %v1941_v8, %v2709_v26 }
 0x4e2   :  { %v1989_v36 = vpack.c.bf16 %v1979_v58, %v1978_v6 }
 0x4e3   :  { %v2209_v2 = vpop.f32.mrb[28].mxu1  ;;  %v1988_v1 = vpack.c.bf16 %v1977_v12, %v1976_v62 }
 0x4e4   :  { %v1962_v11 = vadd.f32 %v2209_v2, %v2102_v0  ;;  %v1953_v46 = vpop.f32.mrb[29].mxu1 }
 0x4e5   :  { %v1954_v52 = vadd.f32 %v2102_v0, %v1953_v46  ;;  %v2210_v61 = vpop.f32.mrb[30].mxu1  ;;  %v2011_v50 = vsel %vm526_vm1, %v1988_v1, 0 }
 0x4e6   :  { %v1965_v25 = vadd.f32 %v2210_v61, %v2102_v0  ;;  %v1956_v44 = vpop.f32.mrb[31].mxu1  ;;  %2216 = vmatpush3.bf16.xpose.msra.mxu0 %v2005_v19  ;;  %v1982_v35 = vmul.f32 %v1962_v11, %v2770_v4  ;;  %v2014_v4 = vsel %vm526_vm1, %v1989_v36, 0 }
 0x4e7   :  { %v1957_v43 = vadd.f32 %v2102_v0, %v1956_v44  ;;  %2217 = vmatprep.subr.bf16.mxu0 %v3987_v15  ;;  %v1980_v26 = vmul.f32 %v1954_v52, %v2750_v49  ;;  %v1994_v0 = vstv %s3929_s12 }
 0x4e8   :  { %v1983_v20 = vmul.f32 %v1965_v25, %v2780_v13  ;;  %v1992_v13 = vld [vmem:[%s3928_s11] sm:$0x1] }
 0x4e9   :  { %v1981_v41 = vmul.f32 %v1957_v43, %v2760_v54 }
 0x4ea   :  { %v1991_v18 = vpack.c.bf16 %v1983_v20, %v1982_v35 }
 0x4eb   :  { %v1990_v21 = vpack.c.bf16 %v1981_v41, %v1980_v26 }
 0x4ec   :  { %v2020_v54 = vsel %vm526_vm1, %v1991_v18, 0 }
 0x4ed   :  { %v2017_v49 = vsel %vm526_vm1, %v1990_v21, 0 }
 0x4ee   :  { %2218 = vmatpush3.bf16.xpose.msra.mxu0 %v2008_v28 }
 0x4ef   :  { %2219 = vmatprep.subr.bf16.mxu0 %v3987_v15 }
 0x4f6   :  { %2220 = vmatpush3.bf16.xpose.msra.mxu0 %v2011_v50 }
 0x4f7   :  { %2221 = vmatprep.subr.bf16.mxu0 %v3987_v15 }
 0x4fe   :  { %2222 = vmatpush3.bf16.xpose.msra.mxu0 %v2014_v4 }
 0x4ff   :  { %2223 = vmatprep.subr.bf16.mxu0 %v3987_v15 }
 0x506   :  { %2224 = vmatpush3.bf16.xpose.msra.mxu0 %v2017_v49 }
 0x507   :  { %2225 = vmatprep.subr.bf16.mxu0 %v3987_v15  ;;  %v2064_v15 = vld [vmem:[%s3930_s2] sm:$0x1] }
 0x50e   :  { %2226 = vmatpush3.bf16.xpose.msra.mxu0 %v2020_v54 }
 0x515   :  { %2228 = vmatmul.mubr.msk.bf16.vlgmr.msra.gmra.mrb[0].mxu0 %vm526_vm1, %v1992_v13 }
 0x5e8   :  { %v2056_v27 = vpop.f32.mrb[0].mxu0 }
 0x5e9   :  { %v2057_v7 = vadd.f32 %v2056_v27, %v1994_v0  ;;  %v2229_v10 = vpop.f32.mrb[1].mxu0 }
 0x5ea   :  { %v2059_v39 = vpop.f32.mrb[2].mxu0 }
 0x5eb   :  { %v2062_v40 = vmul.f32 1.442695, %v2057_v7  ;;  %v2230_v23 = vpop.f32.mrb[3].mxu0 }
 0x5ed   :  { %2485 = vpow2.f32 %v2062_v40 }
 0x5f7   :  { %v2486_v5 = vpop.eup %2485 }
 0x5f8   :  { %v2065_v48 = vmul.f32 %v2486_v5, %v2064_v15 }
 0x5fa   :  { %2066 = vst [vmem:[%s3931_s13] sm:$0x1] %v2065_v48 }

</bundles_post_ra>
